<compile_context>
chip_gen: v6e
topology: v6e:2x2x1
jax: 0.10.0
libtpu: 0.0.40
codegen_flags: <defaults>
</compile_context>

<pallas_src>
import functools

import jax
import jax.numpy as jnp
from jax import lax
from jax.experimental import pallas as pl
from jax.experimental.pallas import tpu as pltpu


# ----------------------------- config helpers -------------------------------
def make_divisible(v, divisor, min_value=None):
    if min_value is None:
        min_value = divisor
    new_v = max(min_value, int(v + divisor / 2) // divisor * divisor)
    if new_v < 0.9 * v:
        new_v += divisor
    return new_v


def adjust_channels(channels, width_mult, min_value=None):
    return make_divisible(channels * width_mult, 8, min_value)


def _silu(v):
    return v * jax.nn.sigmoid(v)


# ------------------------------- Pallas kernel ------------------------------
def mbconv_kernel(x_ref, w_exp_ref, s1_ref, b1_ref,
                  w_dw_ref, s2_ref, b2_ref,
                  w_fc1_ref, b_fc1_ref, w_fc2_ref, b_fc2_ref,
                  w_proj_ref, s3_ref, b3_ref,
                  o_ref, *, kernel_size, height, width, c_exp, use_res_connect):
    H, W, Cexp, K = height, width, c_exp, kernel_size
    P = (K - 1) // 2
    WC = W * Cexp
    inv_hw = 1.0 / float(H * W)

    # ---- 1x1 expand conv (block-diagonal matmul in packed layout) + BN + SiLU ----
    y = jnp.dot(x_ref[0].astype(jnp.bfloat16), w_exp_ref[...],
                preferred_element_type=jnp.float32)            # (H, W*Cexp), f32 acc
    y = y * s1_ref[...] + b1_ref[...]
    y = y * jax.nn.sigmoid(y)                                  # SiLU

    # ---- KxK depthwise conv, stride 1, 'same' (roll + mask, no padded buffers) ----
    # w-boundary zeros are folded into the pre-masked taps (wrapper);
    # h-boundary handled here with an iota row mask.
    h_idx = lax.broadcasted_iota(jnp.int32, (H, 1), 0)
    acc = jnp.zeros((H, WC), jnp.float32)
    for dh in range(K):
        row_shift = (P - dh) % H
        rows = pltpu.roll(y, shift=row_shift, axis=0) if row_shift else y
        part = jnp.zeros((H, WC), jnp.float32)
        for dw in range(K):
            lane_shift = ((P - dw) * Cexp) % WC
            t = pltpu.roll(rows, shift=lane_shift, axis=1) if lane_shift else rows
            part = part + t * w_dw_ref[dh * K + dw]
        hmask = ((h_idx >= P - dh) & (h_idx < H + P - dh)).astype(jnp.float32)
        acc = acc + part * hmask
    z = acc * s2_ref[...] + b2_ref[...]
    z = z * jax.nn.sigmoid(z)                                  # (H, W*Cexp)

    # ---- Squeeze-Excitation (SE weights pre-tiled to the packed lane layout) ----
    pooled = jnp.sum(z, axis=0, keepdims=True) * inv_hw        # (1, W*Cexp)
    se = jnp.dot(pooled, w_fc1_ref[...],
                 preferred_element_type=jnp.float32) + b_fc1_ref[...]   # (1, Csq)
    se = se * jax.nn.sigmoid(se)
    se = jnp.dot(se, w_fc2_ref[...],
                 preferred_element_type=jnp.float32) + b_fc2_ref[...]   # (1, W*Cexp)
    se = jax.nn.sigmoid(se)
    z = z * se

    # ---- 1x1 project conv (block-diagonal matmul) + BN ----
    out = jnp.dot(z.astype(jnp.bfloat16), w_proj_ref[...],
                  preferred_element_type=jnp.float32)          # (H, W*Cout)
    out = out * s3_ref[...] + b3_ref[...]

    # stochastic depth is identity in eval / p == 0
    if use_res_connect:
        out = out + x_ref[0].astype(jnp.float32)               # reload x: keep live range short

    o_ref[0] = out.astype(o_ref.dtype)                         # lane-dense (H, W*Cout) store


# --------------------------------- wrapper ----------------------------------
def _pack_params(params, kernel_size, W):
    """Pre-shape all weights to the kernel's packed (h, w*c) layout (XLA glue)."""
    (w_exp, s1, b1, w_dw, s2, b2,
     w_fc1, b_fc1, w_fc2, b_fc2, w_proj, s3, b3) = params
    Cin, Cexp = w_exp.shape
    Cout = w_proj.shape[1]
    K = kernel_size
    P = (K - 1) // 2

    def lane_tile(v, C):
        return jnp.tile(jnp.asarray(v, jnp.float32).reshape(1, C), (1, W))

    eye_w = jnp.eye(W, dtype=jnp.float32)
    # block-diagonal 1x1-conv weights, bf16 operands for the MXU (f32 accumulation)
    w_exp_big = jnp.kron(eye_w, w_exp).astype(jnp.bfloat16)        # (W*Cin,  W*Cexp)
    w_proj_big = jnp.kron(eye_w, w_proj).astype(jnp.bfloat16)      # (W*Cexp, W*Cout)

    # depthwise taps with the w-boundary mask folded in: (K*K, W*Cexp)
    w_idx = jnp.arange(W)
    taps = []
    for dh in range(K):
        for dw in range(K):
            valid = ((w_idx + dw - P >= 0) & (w_idx + dw - P < W)).astype(jnp.float32)
            taps.append((valid[:, None] * w_dw[dh, dw][None, :]).reshape(W * Cexp))
    w_dw_big = jnp.stack(taps, axis=0)

    # SE weights replicated over w so the SE math stays in the packed layout
    w_fc1_big = jnp.tile(w_fc1, (W, 1))                            # (W*Cexp, Csq)
    w_fc2_big = jnp.tile(w_fc2, (1, W))                            # (Csq, W*Cexp)

    return (w_exp_big, lane_tile(s1, Cexp), lane_tile(b1, Cexp),
            w_dw_big, lane_tile(s2, Cexp), lane_tile(b2, Cexp),
            w_fc1_big, jnp.asarray(b_fc1, jnp.float32).reshape(1, -1),
            w_fc2_big, lane_tile(b_fc2, Cexp),
            w_proj_big, lane_tile(s3, Cout), lane_tile(b3, Cout))


def mbconv_pallas(x_nhwc, params, kernel_size, use_res_connect):
    N, H, W, Cin = x_nhwc.shape
    Cexp = params[0].shape[1]
    Cout = params[10].shape[1]
    K = kernel_size

    kernel_args = _pack_params(params, K, W)
    x_packed = x_nhwc.reshape(N, H, W * Cin)                       # lane-dense input blocks

    def full_spec(a):
        nd = a.ndim
        return pl.BlockSpec(a.shape, lambda n, _nd=nd: (0,) * _nd)

    in_specs = [pl.BlockSpec((1, H, W * Cin), lambda n: (n, 0, 0))]
    in_specs += [full_spec(a) for a in kernel_args]

    kernel = functools.partial(mbconv_kernel, kernel_size=K, height=H, width=W,
                               c_exp=Cexp, use_res_connect=use_res_connect)
    out_packed = pl.pallas_call(
        kernel,
        out_shape=jax.ShapeDtypeStruct((N, H, W * Cout), x_nhwc.dtype),
        grid_spec=pltpu.PrefetchScalarGridSpec(
            num_scalar_prefetch=0,
            grid=(N,),                 # "parallel" over batch: keeps both v7x TCs busy
            in_specs=in_specs,
            out_specs=pl.BlockSpec((1, H, W * Cout), lambda n: (n, 0, 0)),
        ),
        compiler_params=pltpu.CompilerParams(dimension_semantics=("parallel",)),
    )(x_packed, *kernel_args)
    return out_packed.reshape(N, H, W, Cout)


# ------------------------------ JAX reference -------------------------------
def mbconv_ref(x_nhwc, params, use_res_connect, matmul_dtype=jnp.float32):
    (w_exp, s1, b1, w_dw, s2, b2,
     w_fc1, b_fc1, w_fc2, b_fc2, w_proj, s3, b3) = params
    K = w_dw.shape[0]
    Cexp = w_exp.shape[1]
    md = matmul_dtype

    y = jnp.einsum('nhwc,cd->nhwd', x_nhwc.astype(md), w_exp.astype(md),
                   preferred_element_type=jnp.float32) * s1 + b1
    y = _silu(y)
    dw = w_dw.reshape(K, K, 1, Cexp)
    y = lax.conv_general_dilated(y, dw, (1, 1), 'SAME',
                                 dimension_numbers=('NHWC', 'HWIO', 'NHWC'),
                                 feature_group_count=Cexp)
    y = y * s2 + b2
    y = _silu(y)
    s = jnp.mean(y, axis=(1, 2))
    s = _silu(s @ w_fc1 + b_fc1)
    s = jax.nn.sigmoid(s @ w_fc2 + b_fc2)
    y = y * s[:, None, None, :]
    out = jnp.einsum('nhwc,cd->nhwd', y.astype(md), w_proj.astype(md),
                     preferred_element_type=jnp.float32) * s3 + b3
    if use_res_connect:
        out = out + x_nhwc
    return out


# ----------------------------------- main ------------------------------------
if __name__ == "__main__":
    cnf = dict(input_channels=8, out_channels=8, expand_ratio=4.0,
               kernel=3, stride=1)
    N, H, W = 2, 16, 16
    Cin = cnf['input_channels']
    Cout = cnf['out_channels']
    K = cnf['kernel']
    Cexp = adjust_channels(Cin, cnf['expand_ratio'])          # 32 (!= Cin -> expand conv present)
    Csq = max(1, Cin // 4)                                    # 2
    use_res_connect = cnf['stride'] == 1 and Cin == Cout

    key = jax.random.PRNGKey(0)
    ks = jax.random.split(key, 20)

    def bn_fold(kg, kb, km, kv, C, eps=1e-5):
        gamma = 1.0 + 0.1 * jax.random.normal(kg, (C,), jnp.float32)
        beta = 0.1 * jax.random.normal(kb, (C,), jnp.float32)
        mean = 0.1 * jax.random.normal(km, (C,), jnp.float32)
        var = jnp.abs(1.0 + 0.1 * jax.random.normal(kv, (C,), jnp.float32))
        scale = gamma / jnp.sqrt(var + eps)
        bias = beta - mean * scale
        return scale.reshape(1, C), bias.reshape(1, C)

    # weights stored channels-last (PyTorch conv (O, I, 1, 1) -> (I, O) etc.)
    w_exp = jax.random.normal(ks[0], (Cin, Cexp), jnp.float32) / (Cin ** 0.5)
    s1, b1 = bn_fold(ks[1], ks[2], ks[3], ks[4], Cexp)
    w_dw = jax.random.normal(ks[5], (K, K, Cexp), jnp.float32) / 3.0
    s2, b2 = bn_fold(ks[6], ks[7], ks[8], ks[9], Cexp)
    w_fc1 = jax.random.normal(ks[10], (Cexp, Csq), jnp.float32) / (Cexp ** 0.5)
    b_fc1 = 0.1 * jax.random.normal(ks[11], (1, Csq), jnp.float32)
    w_fc2 = jax.random.normal(ks[12], (Csq, Cexp), jnp.float32) / (Csq ** 0.5)
    b_fc2 = 0.1 * jax.random.normal(ks[13], (1, Cexp), jnp.float32)
    w_proj = jax.random.normal(ks[14], (Cexp, Cout), jnp.float32) / (Cexp ** 0.5)
    s3, b3 = bn_fold(ks[15], ks[16], ks[17], ks[18], Cout)

    params = (w_exp, s1, b1, w_dw, s2, b2,
              w_fc1, b_fc1, w_fc2, b_fc2, w_proj, s3, b3)

    # PyTorch-style NCHW input -> NHWC for the kernel wrapper
    x_nchw = jax.random.normal(ks[19], (N, Cin, H, W), jnp.float32)
    x_nhwc = jnp.transpose(x_nchw, (0, 2, 3, 1))

    out = mbconv_pallas(x_nhwc, params, K, use_res_connect)
    out = jax.block_until_ready(out)

    # matched-precision reference (bf16 MXU operands, like the kernel) + f32 sanity check
    ref_bf16 = mbconv_ref(x_nhwc, params, use_res_connect, matmul_dtype=jnp.bfloat16)
    ref_f32 = mbconv_ref(x_nhwc, params, use_res_connect, matmul_dtype=jnp.float32)

    ok_matched = jnp.allclose(out, ref_bf16, atol=1e-2, rtol=1e-2)
    ok_f32 = jnp.allclose(out, ref_f32, atol=1e-1, rtol=1e-1)
    if not (ok_matched and ok_f32):
        raise AssertionError(
            "Pallas MBConv mismatch: max abs err vs bf16-matmul ref = "
            f"{float(jnp.max(jnp.abs(out - ref_bf16)))}, vs f32 ref = "
            f"{float(jnp.max(jnp.abs(out - ref_f32)))}")
    print("KERNEL_OK")
</pallas_src>

<mosaic_0001>
module attributes {stable_mosaic.version = 11 : i64} {
  func.func @mbconv_kernel(%arg0: i32, %arg1: memref<1x16x128xf32, #tpu.memory_space<vmem>>, %arg2: memref<128x512xbf16, #tpu.memory_space<vmem>>, %arg3: memref<1x512xf32, #tpu.memory_space<vmem>>, %arg4: memref<1x512xf32, #tpu.memory_space<vmem>>, %arg5: memref<9x512xf32, #tpu.memory_space<vmem>>, %arg6: memref<1x512xf32, #tpu.memory_space<vmem>>, %arg7: memref<1x512xf32, #tpu.memory_space<vmem>>, %arg8: memref<512x2xf32, #tpu.memory_space<vmem>>, %arg9: memref<1x2xf32, #tpu.memory_space<vmem>>, %arg10: memref<2x512xf32, #tpu.memory_space<vmem>>, %arg11: memref<1x512xf32, #tpu.memory_space<vmem>>, %arg12: memref<512x128xbf16, #tpu.memory_space<vmem>>, %arg13: memref<1x128xf32, #tpu.memory_space<vmem>>, %arg14: memref<1x128xf32, #tpu.memory_space<vmem>>, %arg15: memref<1x16x128xf32, #tpu.memory_space<vmem>>) attributes {dimension_semantics = [#tpu.dimension_semantics<parallel>], iteration_bounds = array<i64: 2>, scalar_prefetch = 0 : i64, scratch_operands = 0 : i64, tpu.core_type = #tpu.core_type<tc>, window_params = [{transform_indices = @transform_0, window_bounds = array<i64: 1, 16, 128>}, {pipeline_mode = #tpu.pipeline_mode<synchronous>, transform_indices = @transform_1, window_bounds = array<i64: 128, 512>}, {pipeline_mode = #tpu.pipeline_mode<synchronous>, transform_indices = @transform_2, window_bounds = array<i64: 1, 512>}, {pipeline_mode = #tpu.pipeline_mode<synchronous>, transform_indices = @transform_3, window_bounds = array<i64: 1, 512>}, {pipeline_mode = #tpu.pipeline_mode<synchronous>, transform_indices = @transform_4, window_bounds = array<i64: 9, 512>}, {pipeline_mode = #tpu.pipeline_mode<synchronous>, transform_indices = @transform_5, window_bounds = array<i64: 1, 512>}, {pipeline_mode = #tpu.pipeline_mode<synchronous>, transform_indices = @transform_6, window_bounds = array<i64: 1, 512>}, {pipeline_mode = #tpu.pipeline_mode<synchronous>, transform_indices = @transform_7, window_bounds = array<i64: 512, 2>}, {pipeline_mode = #tpu.pipeline_mode<synchronous>, transform_indices = @transform_8, window_bounds = array<i64: 1, 2>}, {pipeline_mode = #tpu.pipeline_mode<synchronous>, transform_indices = @transform_9, window_bounds = array<i64: 2, 512>}, {pipeline_mode = #tpu.pipeline_mode<synchronous>, transform_indices = @transform_10, window_bounds = array<i64: 1, 512>}, {pipeline_mode = #tpu.pipeline_mode<synchronous>, transform_indices = @transform_11, window_bounds = array<i64: 512, 128>}, {pipeline_mode = #tpu.pipeline_mode<synchronous>, transform_indices = @transform_12, window_bounds = array<i64: 1, 128>}, {pipeline_mode = #tpu.pipeline_mode<synchronous>, transform_indices = @transform_13, window_bounds = array<i64: 1, 128>}, {transform_indices = @transform_14, window_bounds = array<i64: 1, 16, 128>}]} {
    %c0 = arith.constant 0 : index
    %c0_0 = arith.constant 0 : index
    %c0_1 = arith.constant 0 : index
    %0 = vector.load %arg1[%c0, %c0_0, %c0_1] : memref<1x16x128xf32, #tpu.memory_space<vmem>>, vector<1x16x128xf32>
    %1 = vector.shape_cast %0 : vector<1x16x128xf32> to vector<16x128xf32>
    %2 = arith.truncf %1 : vector<16x128xf32> to vector<16x128xbf16>
    %c0_2 = arith.constant 0 : index
    %c0_3 = arith.constant 0 : index
    %3 = vector.load %arg2[%c0_2, %c0_3] : memref<128x512xbf16, #tpu.memory_space<vmem>>, vector<128x512xbf16>
    %cst = arith.constant dense<0.000000e+00> : vector<16x512xf32>
    %4 = tpu.matmul %2, %3, %cst {dimension_numbers = #tpu.dot_dimension_numbers<[1], [0], [0], [1], [0, 0, 1, 1], [], []>} : vector<16x128xbf16>, vector<128x512xbf16>, vector<16x512xf32> -> vector<16x512xf32>
    %c0_4 = arith.constant 0 : index
    %c0_5 = arith.constant 0 : index
    %5 = vector.load %arg3[%c0_4, %c0_5] : memref<1x512xf32, #tpu.memory_space<vmem>>, vector<1x512xf32>
    %6 = vector.broadcast %5 : vector<1x512xf32> to vector<16x512xf32>
    %7 = arith.mulf %4, %6 : vector<16x512xf32>
    %c0_6 = arith.constant 0 : index
    %c0_7 = arith.constant 0 : index
    %8 = vector.load %arg4[%c0_6, %c0_7] : memref<1x512xf32, #tpu.memory_space<vmem>>, vector<1x512xf32>
    %9 = vector.broadcast %8 : vector<1x512xf32> to vector<16x512xf32>
    %10 = arith.addf %7, %9 : vector<16x512xf32>
    %11 = arith.negf %10 : vector<16x512xf32>
    %12 = math.exp %11 : vector<16x512xf32>
    %cst_8 = arith.constant 1.000000e+00 : f32
    %13 = vector.broadcast %cst_8 : f32 to vector<16x512xf32>
    %14 = arith.addf %13, %12 : vector<16x512xf32>
    %15 = arith.divf %13, %14 : vector<16x512xf32>
    %16 = arith.mulf %10, %15 : vector<16x512xf32>
    %17 = tpu.iota {dimensions = array<i32: 0>} : vector<16x1xi32>
    %cst_9 = arith.constant 0.000000e+00 : f32
    %18 = vector.broadcast %cst_9 : f32 to vector<16x512xf32>
    %c1_i32 = arith.constant 1 : i32
    %19 = tpu.dynamic_rotate %16 by %c1_i32 dim 0 : vector<16x512xf32>, i32 -> vector<16x512xf32>
    %cst_10 = arith.constant 0.000000e+00 : f32
    %20 = vector.broadcast %cst_10 : f32 to vector<16x512xf32>
    %c32_i32 = arith.constant 32 : i32
    %21 = tpu.dynamic_rotate %19 by %c32_i32 dim 1 : vector<16x512xf32>, i32 -> vector<16x512xf32>
    %c0_11 = arith.constant 0 : index
    %c0_12 = arith.constant 0 : index
    %22 = vector.load %arg5[%c0_11, %c0_12] : memref<9x512xf32, #tpu.memory_space<vmem>>, vector<1x512xf32>
    %23 = vector.shape_cast %22 : vector<1x512xf32> to vector<512xf32>
    %24 = vector.shape_cast %23 : vector<512xf32> to vector<1x512xf32>
    %25 = vector.broadcast %24 : vector<1x512xf32> to vector<16x512xf32>
    %26 = arith.mulf %21, %25 : vector<16x512xf32>
    %27 = arith.addf %20, %26 : vector<16x512xf32>
    %c1 = arith.constant 1 : index
    %c0_13 = arith.constant 0 : index
    %28 = vector.load %arg5[%c1, %c0_13] : memref<9x512xf32, #tpu.memory_space<vmem>>, vector<1x512xf32>
    %29 = vector.shape_cast %28 : vector<1x512xf32> to vector<512xf32>
    %30 = vector.shape_cast %29 : vector<512xf32> to vector<1x512xf32>
    %31 = vector.broadcast %30 : vector<1x512xf32> to vector<16x512xf32>
    %32 = arith.mulf %19, %31 : vector<16x512xf32>
    %33 = arith.addf %27, %32 : vector<16x512xf32>
    %c480_i32 = arith.constant 480 : i32
    %34 = tpu.dynamic_rotate %19 by %c480_i32 dim 1 : vector<16x512xf32>, i32 -> vector<16x512xf32>
    %c2 = arith.constant 2 : index
    %c0_14 = arith.constant 0 : index
    %35 = vector.load %arg5[%c2, %c0_14] : memref<9x512xf32, #tpu.memory_space<vmem>>, vector<1x512xf32>
    %36 = vector.shape_cast %35 : vector<1x512xf32> to vector<512xf32>
    %37 = vector.shape_cast %36 : vector<512xf32> to vector<1x512xf32>
    %38 = vector.broadcast %37 : vector<1x512xf32> to vector<16x512xf32>
    %39 = arith.mulf %34, %38 : vector<16x512xf32>
    %40 = arith.addf %33, %39 : vector<16x512xf32>
    %c1_i32_15 = arith.constant 1 : i32
    %41 = vector.broadcast %c1_i32_15 : i32 to vector<16x1xi32>
    %42 = arith.cmpi sge, %17, %41 : vector<16x1xi32>
    %c17_i32 = arith.constant 17 : i32
    %43 = vector.broadcast %c17_i32 : i32 to vector<16x1xi32>
    %44 = arith.cmpi slt, %17, %43 : vector<16x1xi32>
    %45 = arith.andi %42, %44 : vector<16x1xi1>
    %46 = arith.extui %45 : vector<16x1xi1> to vector<16x1xi32>
    %47 = arith.sitofp %46 : vector<16x1xi32> to vector<16x1xf32>
    %48 = vector.broadcast %47 : vector<16x1xf32> to vector<16x512xf32>
    %49 = arith.mulf %40, %48 : vector<16x512xf32>
    %50 = arith.addf %18, %49 : vector<16x512xf32>
    %cst_16 = arith.constant 0.000000e+00 : f32
    %51 = vector.broadcast %cst_16 : f32 to vector<16x512xf32>
    %c32_i32_17 = arith.constant 32 : i32
    %52 = tpu.dynamic_rotate %16 by %c32_i32_17 dim 1 : vector<16x512xf32>, i32 -> vector<16x512xf32>
    %c3 = arith.constant 3 : index
    %c0_18 = arith.constant 0 : index
    %53 = vector.load %arg5[%c3, %c0_18] : memref<9x512xf32, #tpu.memory_space<vmem>>, vector<1x512xf32>
    %54 = vector.shape_cast %53 : vector<1x512xf32> to vector<512xf32>
    %55 = vector.shape_cast %54 : vector<512xf32> to vector<1x512xf32>
    %56 = vector.broadcast %55 : vector<1x512xf32> to vector<16x512xf32>
    %57 = arith.mulf %52, %56 : vector<16x512xf32>
    %58 = arith.addf %51, %57 : vector<16x512xf32>
    %c4 = arith.constant 4 : index
    %c0_19 = arith.constant 0 : index
    %59 = vector.load %arg5[%c4, %c0_19] : memref<9x512xf32, #tpu.memory_space<vmem>>, vector<1x512xf32>
    %60 = vector.shape_cast %59 : vector<1x512xf32> to vector<512xf32>
    %61 = vector.shape_cast %60 : vector<512xf32> to vector<1x512xf32>
    %62 = vector.broadcast %61 : vector<1x512xf32> to vector<16x512xf32>
    %63 = arith.mulf %16, %62 : vector<16x512xf32>
    %64 = arith.addf %58, %63 : vector<16x512xf32>
    %c480_i32_20 = arith.constant 480 : i32
    %65 = tpu.dynamic_rotate %16 by %c480_i32_20 dim 1 : vector<16x512xf32>, i32 -> vector<16x512xf32>
    %c5 = arith.constant 5 : index
    %c0_21 = arith.constant 0 : index
    %66 = vector.load %arg5[%c5, %c0_21] : memref<9x512xf32, #tpu.memory_space<vmem>>, vector<1x512xf32>
    %67 = vector.shape_cast %66 : vector<1x512xf32> to vector<512xf32>
    %68 = vector.shape_cast %67 : vector<512xf32> to vector<1x512xf32>
    %69 = vector.broadcast %68 : vector<1x512xf32> to vector<16x512xf32>
    %70 = arith.mulf %65, %69 : vector<16x512xf32>
    %71 = arith.addf %64, %70 : vector<16x512xf32>
    %c0_i32 = arith.constant 0 : i32
    %72 = vector.broadcast %c0_i32 : i32 to vector<16x1xi32>
    %73 = arith.cmpi sge, %17, %72 : vector<16x1xi32>
    %c16_i32 = arith.constant 16 : i32
    %74 = vector.broadcast %c16_i32 : i32 to vector<16x1xi32>
    %75 = arith.cmpi slt, %17, %74 : vector<16x1xi32>
    %76 = arith.andi %73, %75 : vector<16x1xi1>
    %77 = arith.extui %76 : vector<16x1xi1> to vector<16x1xi32>
    %78 = arith.sitofp %77 : vector<16x1xi32> to vector<16x1xf32>
    %79 = vector.broadcast %78 : vector<16x1xf32> to vector<16x512xf32>
    %80 = arith.mulf %71, %79 : vector<16x512xf32>
    %81 = arith.addf %50, %80 : vector<16x512xf32>
    %c15_i32 = arith.constant 15 : i32
    %82 = tpu.dynamic_rotate %16 by %c15_i32 dim 0 : vector<16x512xf32>, i32 -> vector<16x512xf32>
    %cst_22 = arith.constant 0.000000e+00 : f32
    %83 = vector.broadcast %cst_22 : f32 to vector<16x512xf32>
    %c32_i32_23 = arith.constant 32 : i32
    %84 = tpu.dynamic_rotate %82 by %c32_i32_23 dim 1 : vector<16x512xf32>, i32 -> vector<16x512xf32>
    %c6 = arith.constant 6 : index
    %c0_24 = arith.constant 0 : index
    %85 = vector.load %arg5[%c6, %c0_24] : memref<9x512xf32, #tpu.memory_space<vmem>>, vector<1x512xf32>
    %86 = vector.shape_cast %85 : vector<1x512xf32> to vector<512xf32>
    %87 = vector.shape_cast %86 : vector<512xf32> to vector<1x512xf32>
    %88 = vector.broadcast %87 : vector<1x512xf32> to vector<16x512xf32>
    %89 = arith.mulf %84, %88 : vector<16x512xf32>
    %90 = arith.addf %83, %89 : vector<16x512xf32>
    %c7 = arith.constant 7 : index
    %c0_25 = arith.constant 0 : index
    %91 = vector.load %arg5[%c7, %c0_25] : memref<9x512xf32, #tpu.memory_space<vmem>>, vector<1x512xf32>
    %92 = vector.shape_cast %91 : vector<1x512xf32> to vector<512xf32>
    %93 = vector.shape_cast %92 : vector<512xf32> to vector<1x512xf32>
    %94 = vector.broadcast %93 : vector<1x512xf32> to vector<16x512xf32>
    %95 = arith.mulf %82, %94 : vector<16x512xf32>
    %96 = arith.addf %90, %95 : vector<16x512xf32>
    %c480_i32_26 = arith.constant 480 : i32
    %97 = tpu.dynamic_rotate %82 by %c480_i32_26 dim 1 : vector<16x512xf32>, i32 -> vector<16x512xf32>
    %c8 = arith.constant 8 : index
    %c0_27 = arith.constant 0 : index
    %98 = vector.load %arg5[%c8, %c0_27] : memref<9x512xf32, #tpu.memory_space<vmem>>, vector<1x512xf32>
    %99 = vector.shape_cast %98 : vector<1x512xf32> to vector<512xf32>
    %100 = vector.shape_cast %99 : vector<512xf32> to vector<1x512xf32>
    %101 = vector.broadcast %100 : vector<1x512xf32> to vector<16x512xf32>
    %102 = arith.mulf %97, %101 : vector<16x512xf32>
    %103 = arith.addf %96, %102 : vector<16x512xf32>
    %c-1_i32 = arith.constant -1 : i32
    %104 = vector.broadcast %c-1_i32 : i32 to vector<16x1xi32>
    %105 = arith.cmpi sge, %17, %104 : vector<16x1xi32>
    %c15_i32_28 = arith.constant 15 : i32
    %106 = vector.broadcast %c15_i32_28 : i32 to vector<16x1xi32>
    %107 = arith.cmpi slt, %17, %106 : vector<16x1xi32>
    %108 = arith.andi %105, %107 : vector<16x1xi1>
    %109 = arith.extui %108 : vector<16x1xi1> to vector<16x1xi32>
    %110 = arith.sitofp %109 : vector<16x1xi32> to vector<16x1xf32>
    %111 = vector.broadcast %110 : vector<16x1xf32> to vector<16x512xf32>
    %112 = arith.mulf %103, %111 : vector<16x512xf32>
    %113 = arith.addf %81, %112 : vector<16x512xf32>
    %c0_29 = arith.constant 0 : index
    %c0_30 = arith.constant 0 : index
    %114 = vector.load %arg6[%c0_29, %c0_30] : memref<1x512xf32, #tpu.memory_space<vmem>>, vector<1x512xf32>
    %115 = vector.broadcast %114 : vector<1x512xf32> to vector<16x512xf32>
    %116 = arith.mulf %113, %115 : vector<16x512xf32>
    %c0_31 = arith.constant 0 : index
    %c0_32 = arith.constant 0 : index
    %117 = vector.load %arg7[%c0_31, %c0_32] : memref<1x512xf32, #tpu.memory_space<vmem>>, vector<1x512xf32>
    %118 = vector.broadcast %117 : vector<1x512xf32> to vector<16x512xf32>
    %119 = arith.addf %116, %118 : vector<16x512xf32>
    %120 = arith.negf %119 : vector<16x512xf32>
    %121 = math.exp %120 : vector<16x512xf32>
    %cst_33 = arith.constant 1.000000e+00 : f32
    %122 = vector.broadcast %cst_33 : f32 to vector<16x512xf32>
    %123 = arith.addf %122, %121 : vector<16x512xf32>
    %124 = arith.divf %122, %123 : vector<16x512xf32>
    %125 = arith.mulf %119, %124 : vector<16x512xf32>
    %cst_34 = arith.constant dense<0.000000e+00> : vector<512xf32>
    %126 = vector.multi_reduction <add>, %125, %cst_34 [0] : vector<16x512xf32> to vector<512xf32>
    %127 = vector.shape_cast %126 : vector<512xf32> to vector<1x512xf32>
    %cst_35 = arith.constant 3.906250e-03 : f32
    %128 = vector.broadcast %cst_35 : f32 to vector<1x512xf32>
    %129 = arith.mulf %127, %128 : vector<1x512xf32>
    %c0_36 = arith.constant 0 : index
    %c0_37 = arith.constant 0 : index
    %130 = vector.load %arg8[%c0_36, %c0_37] : memref<512x2xf32, #tpu.memory_space<vmem>>, vector<512x2xf32>
    %cst_38 = arith.constant dense<0.000000e+00> : vector<1x2xf32>
    %131 = tpu.matmul %129, %130, %cst_38 {dimension_numbers = #tpu.dot_dimension_numbers<[1], [0], [0], [1], [0, 0, 1, 1], [], []>} : vector<1x512xf32>, vector<512x2xf32>, vector<1x2xf32> -> vector<1x2xf32>
    %c0_39 = arith.constant 0 : index
    %c0_40 = arith.constant 0 : index
    %132 = vector.load %arg9[%c0_39, %c0_40] : memref<1x2xf32, #tpu.memory_space<vmem>>, vector<1x2xf32>
    %133 = arith.addf %131, %132 : vector<1x2xf32>
    %134 = arith.negf %133 : vector<1x2xf32>
    %135 = math.exp %134 : vector<1x2xf32>
    %cst_41 = arith.constant 1.000000e+00 : f32
    %136 = vector.broadcast %cst_41 : f32 to vector<1x2xf32>
    %137 = arith.addf %136, %135 : vector<1x2xf32>
    %138 = arith.divf %136, %137 : vector<1x2xf32>
    %139 = arith.mulf %133, %138 : vector<1x2xf32>
    %c0_42 = arith.constant 0 : index
    %c0_43 = arith.constant 0 : index
    %140 = vector.load %arg10[%c0_42, %c0_43] : memref<2x512xf32, #tpu.memory_space<vmem>>, vector<2x512xf32>
    %cst_44 = arith.constant dense<0.000000e+00> : vector<1x512xf32>
    %141 = tpu.matmul %139, %140, %cst_44 {dimension_numbers = #tpu.dot_dimension_numbers<[1], [0], [0], [1], [0, 0, 1, 1], [], []>} : vector<1x2xf32>, vector<2x512xf32>, vector<1x512xf32> -> vector<1x512xf32>
    %c0_45 = arith.constant 0 : index
    %c0_46 = arith.constant 0 : index
    %142 = vector.load %arg11[%c0_45, %c0_46] : memref<1x512xf32, #tpu.memory_space<vmem>>, vector<1x512xf32>
    %143 = arith.addf %141, %142 : vector<1x512xf32>
    %144 = arith.negf %143 : vector<1x512xf32>
    %145 = math.exp %144 : vector<1x512xf32>
    %cst_47 = arith.constant 1.000000e+00 : f32
    %146 = vector.broadcast %cst_47 : f32 to vector<1x512xf32>
    %147 = arith.addf %146, %145 : vector<1x512xf32>
    %148 = arith.divf %146, %147 : vector<1x512xf32>
    %149 = vector.broadcast %148 : vector<1x512xf32> to vector<16x512xf32>
    %150 = arith.mulf %125, %149 : vector<16x512xf32>
    %151 = arith.truncf %150 : vector<16x512xf32> to vector<16x512xbf16>
    %c0_48 = arith.constant 0 : index
    %c0_49 = arith.constant 0 : index
    %152 = vector.load %arg12[%c0_48, %c0_49] : memref<512x128xbf16, #tpu.memory_space<vmem>>, vector<512x128xbf16>
    %cst_50 = arith.constant dense<0.000000e+00> : vector<16x128xf32>
    %153 = tpu.matmul %151, %152, %cst_50 {dimension_numbers = #tpu.dot_dimension_numbers<[1], [0], [0], [1], [0, 0, 1, 1], [], []>} : vector<16x512xbf16>, vector<512x128xbf16>, vector<16x128xf32> -> vector<16x128xf32>
    %c0_51 = arith.constant 0 : index
    %c0_52 = arith.constant 0 : index
    %154 = vector.load %arg13[%c0_51, %c0_52] : memref<1x128xf32, #tpu.memory_space<vmem>>, vector<1x128xf32>
    %155 = vector.broadcast %154 : vector<1x128xf32> to vector<16x128xf32>
    %156 = arith.mulf %153, %155 : vector<16x128xf32>
    %c0_53 = arith.constant 0 : index
    %c0_54 = arith.constant 0 : index
    %157 = vector.load %arg14[%c0_53, %c0_54] : memref<1x128xf32, #tpu.memory_space<vmem>>, vector<1x128xf32>
    %158 = vector.broadcast %157 : vector<1x128xf32> to vector<16x128xf32>
    %159 = arith.addf %156, %158 : vector<16x128xf32>
    %c0_55 = arith.constant 0 : index
    %c0_56 = arith.constant 0 : index
    %c0_57 = arith.constant 0 : index
    %160 = vector.load %arg1[%c0_55, %c0_56, %c0_57] : memref<1x16x128xf32, #tpu.memory_space<vmem>>, vector<1x16x128xf32>
    %161 = vector.shape_cast %160 : vector<1x16x128xf32> to vector<16x128xf32>
    %162 = arith.addf %159, %161 : vector<16x128xf32>
    %c0_58 = arith.constant 0 : index
    %c0_59 = arith.constant 0 : index
    %c0_60 = arith.constant 0 : index
    %163 = vector.load %arg15[%c0_58, %c0_59, %c0_60] : memref<1x16x128xf32, #tpu.memory_space<vmem>>, vector<1x16x128xf32>
    %164 = vector.shape_cast %163 : vector<1x16x128xf32> to vector<16x128xf32>
    %165 = vector.shape_cast %162 : vector<16x128xf32> to vector<1x16x128xf32>
    tpu.vector_store %arg15[%c0_58, %c0_59, %c0_60], %165 {strides = array<i32>} : memref<1x16x128xf32, #tpu.memory_space<vmem>>, vector<1x16x128xf32>,
    return
  }
  func.func @transform_0(%arg0: i32) -> (i32, i32, i32) {
    %c0_i32 = arith.constant 0 : i32
    %c0_i32_0 = arith.constant 0 : i32
    %c0_i32_1 = arith.constant 0 : i32
    return %arg0, %c0_i32, %c0_i32_0 : i32, i32, i32
  }
  func.func @transform_1(%arg0: i32) -> (i32, i32) {
    %c0_i32 = arith.constant 0 : i32
    %c0_i32_0 = arith.constant 0 : i32
    %c0_i32_1 = arith.constant 0 : i32
    return %c0_i32, %c0_i32_0 : i32, i32
  }
  func.func @transform_2(%arg0: i32) -> (i32, i32) {
    %c0_i32 = arith.constant 0 : i32
    %c0_i32_0 = arith.constant 0 : i32
    %c0_i32_1 = arith.constant 0 : i32
    return %c0_i32, %c0_i32_0 : i32, i32
  }
  func.func @transform_3(%arg0: i32) -> (i32, i32) {
    %c0_i32 = arith.constant 0 : i32
    %c0_i32_0 = arith.constant 0 : i32
    %c0_i32_1 = arith.constant 0 : i32
    return %c0_i32, %c0_i32_0 : i32, i32
  }
  func.func @transform_4(%arg0: i32) -> (i32, i32) {
    %c0_i32 = arith.constant 0 : i32
    %c0_i32_0 = arith.constant 0 : i32
    %c0_i32_1 = arith.constant 0 : i32
    return %c0_i32, %c0_i32_0 : i32, i32
  }
  func.func @transform_5(%arg0: i32) -> (i32, i32) {
    %c0_i32 = arith.constant 0 : i32
    %c0_i32_0 = arith.constant 0 : i32
    %c0_i32_1 = arith.constant 0 : i32
    return %c0_i32, %c0_i32_0 : i32, i32
  }
  func.func @transform_6(%arg0: i32) -> (i32, i32) {
    %c0_i32 = arith.constant 0 : i32
    %c0_i32_0 = arith.constant 0 : i32
    %c0_i32_1 = arith.constant 0 : i32
    return %c0_i32, %c0_i32_0 : i32, i32
  }
  func.func @transform_7(%arg0: i32) -> (i32, i32) {
    %c0_i32 = arith.constant 0 : i32
    %c0_i32_0 = arith.constant 0 : i32
    %c0_i32_1 = arith.constant 0 : i32
    return %c0_i32, %c0_i32_0 : i32, i32
  }
  func.func @transform_8(%arg0: i32) -> (i32, i32) {
    %c0_i32 = arith.constant 0 : i32
    %c0_i32_0 = arith.constant 0 : i32
    %c0_i32_1 = arith.constant 0 : i32
    return %c0_i32, %c0_i32_0 : i32, i32
  }
  func.func @transform_9(%arg0: i32) -> (i32, i32) {
    %c0_i32 = arith.constant 0 : i32
    %c0_i32_0 = arith.constant 0 : i32
    %c0_i32_1 = arith.constant 0 : i32
    return %c0_i32, %c0_i32_0 : i32, i32
  }
  func.func @transform_10(%arg0: i32) -> (i32, i32) {
    %c0_i32 = arith.constant 0 : i32
    %c0_i32_0 = arith.constant 0 : i32
    %c0_i32_1 = arith.constant 0 : i32
    return %c0_i32, %c0_i32_0 : i32, i32
  }
  func.func @transform_11(%arg0: i32) -> (i32, i32) {
    %c0_i32 = arith.constant 0 : i32
    %c0_i32_0 = arith.constant 0 : i32
    %c0_i32_1 = arith.constant 0 : i32
    return %c0_i32, %c0_i32_0 : i32, i32
  }
  func.func @transform_12(%arg0: i32) -> (i32, i32) {
    %c0_i32 = arith.constant 0 : i32
    %c0_i32_0 = arith.constant 0 : i32
    %c0_i32_1 = arith.constant 0 : i32
    return %c0_i32, %c0_i32_0 : i32, i32
  }
  func.func @transform_13(%arg0: i32) -> (i32, i32) {
    %c0_i32 = arith.constant 0 : i32
    %c0_i32_0 = arith.constant 0 : i32
    %c0_i32_1 = arith.constant 0 : i32
    return %c0_i32, %c0_i32_0 : i32, i32
  }
  func.func @transform_14(%arg0: i32) -> (i32, i32, i32) {
    %c0_i32 = arith.constant 0 : i32
    %c0_i32_0 = arith.constant 0 : i32
    %c0_i32_1 = arith.constant 0 : i32
    return %arg0, %c0_i32, %c0_i32_0 : i32, i32, i32
  }
}

</mosaic_0001>

<bundles_post_ra>
// kernel: tpu_custom_call.1
= control target key start
LH: loop header
LB: loop body
LE: loop exit
PB: predicated region body
PF: predicated region fallthrough
CT: control target
= control target key end

     0   :  { %s4867_s0 = inlined_call_operand.hbm [shape: f32[2,16,128], index: 0, kind: input, shape index: {}]   ;;  %s4868_s1 = inlined_call_operand.vmem [shape: bf16[128,512], index: 1, kind: input, shape index: {}]   ;;  %s4869_s2 = inlined_call_operand.hbm [shape: f32[1,512], index: 2, kind: input, shape index: {}]   ;;  %s4870_s3 = inlined_call_operand.vmem [shape: f32[1,512], index: 3, kind: input, shape index: {}]   ;;  %s4871_s4 = inlined_call_operand.hbm [shape: f32[9,512], index: 4, kind: input, shape index: {}]   ;;  %s4872_s5 = inlined_call_operand.hbm [shape: f32[1,512], index: 5, kind: input, shape index: {}]   ;;  %s4873_s6 = inlined_call_operand.hbm [shape: f32[1,512], index: 6, kind: input, shape index: {}]   ;;  %s4874_s7 = inlined_call_operand.vmem [shape: f32[512,2], index: 7, kind: input, shape index: {}]   ;;  %s4875_s8 = inlined_call_operand.hbm [shape: f32[1,2], index: 8, kind: input, shape index: {}]   ;;  %s4876_s9 = inlined_call_operand.vmem [shape: f32[2,512], index: 9, kind: input, shape index: {}]   ;;  %s4877_s10 = inlined_call_operand.vmem [shape: f32[1,512], index: 10, kind: input, shape index: {}]   ;;  %s4878_s11 = inlined_call_operand.vmem [shape: bf16[512,128], index: 11, kind: input, shape index: {}]   ;;  %s4879_s12 = inlined_call_operand.vmem [shape: f32[1,128], index: 12, kind: input, shape index: {}]   ;;  %s4880_s13 = inlined_call_operand.vmem [shape: f32[1,128], index: 13, kind: input, shape index: {}]   ;;  %s4881_s14 = inlined_call_operand.hbm [shape: f32[2,16,128], index: 14, kind: output, shape index: {}]  }
   0x1   :  { %4903 = sst [smem:[#allocation42_spill]] %s4869_s2 }
   0x2   :  { %4904 = sst [smem:[#allocation43_spill]] %s4871_s4 }
   0x3   :  { %4905 = sst [smem:[#allocation44_spill]] %s4872_s5 }
   0x4   :  { %4906 = sst [smem:[#allocation45_spill]] %s4873_s6 }
   0x5   :  { %4907 = sst [smem:[#allocation46_spill]] %s4875_s8 }
   0x6   :  { %4908 = sst [smem:[#allocation47_spill]] %s4881_s14 }
   0x7   :  { %19 = vsyncpa [#allocation3], 0 }
   0x8   :  { %21 = vsyncpa [#allocation3 + $0x1], 0 }
   0x9   :  { %22 = vsyncpa [#allocation6], 0 }
   0xa   :  { %23 = vsyncpa [#allocation9], 0 }
   0xb   :  { %24 = vsyncpa [#allocation12], 0 }
   0xc   :  { %25 = vsyncpa [#allocation4], 0 }
   0xd   :  { %27 = vsyncpa [#allocation4 + $0x1], 0  ;;  %s3504_s29 = smov 0   ;;  %s3506_s30 = smov 0  }
   0xe   :  { %s3508_s15 = smov 0   ;;  %s3510_s16 = smov 0  }
   0xf LB: > { %4909 = sst [smem:[#allocation19_spill]] %s3405_s15  ;;  %s3411_s17 = smov [#allocation5]   ;;  %s3409_s16 = sphi %s3510_s16, %s4984_s16   ;;  %s3405_s15 = sphi %s3508_s15, %s4981_s15   ;;  %s3401_s30 = sphi %s3506_s30, %s4983_s30   ;;  %s3397_s29 = sphi %s3504_s29, %s4982_s29  }
  0x10   : > { %s379_s18 = sshll.u32 %s3411_s17, 4  ;;  %s3525_s19 = sadd.s32 4294967295, %s3409_s16   ;;  %s380_s18 = int_to_ptr.vmem [resolvable:$true] %s379_s18 }
  0x11   : > { %p2666_p0 = scmp.ge.s32.totalorder %s3409_s16, 1  ;;  %p4882_p1 = scmp.eq.s32.totalorder %s3525_s19, 0 }
  0x12   : > { %p363_p2 = scmp.lt.s32.totalorder %s3409_s16, 3  ;;  %s3412_s21 = smov [#allocation8]  }
  0x13   : > { %s406_s22 = sshll.u32 %s3412_s21, 4  ;;  %s3413_s23 = smov [#allocation7]   ;;  %s407_s22 = int_to_ptr.vmem [resolvable:$true] %s406_s22 }
  0x14   : > { %p3530_p3 = pnand %p2666_p0, %p363_p2  ;;  %s392_s24 = sshll.u32 %s3413_s23, 4  ;;  %s3543_s24 = int_to_ptr.vmem [resolvable:$true] %s392_s24 }
  0x15   : > { %s3186_s27 = scalar_lea.vmem %s380_s18, 64  ;;  %p3194_p11 = scmp.lt.s32.totalorder %s380_s18, %s380_s18 }
  0x16   : > { %s4910_s20 = scalar_select %p3530_p3, 1, 0 }
  0x17   : > { %p2924_p5 = pneg %p3530_p3  ;;  %p3187_p8 = scmp.ne.s32.totalorder %s380_s18, %s3186_s27 }
  0x18   : > { %p3195_p12 = scmp.lt.s32.totalorder %s3186_s27, %s3186_s27 }
  0x19   : > { %p3539_p6 = pnand %p2924_p5, %p4882_p1 }
  0x1a   : > { %p3196_p13 = por %p3195_p12, %p3194_p11 }
  0x1b   : > { %p3547_p7 = pneg %p3539_p6 }
  0x1d   : > { %p3189_p9 = pnand %p3187_p8, %p3547_p7 }
  0x1f   : > { %p3190_p10 = pneg %p3189_p9 }
  0x21   : > { %p3197_p0 = pnand %p3196_p13, %p3190_p10 }
  0x23   : > { %3200 = shalt.err (!%p3197_p0)
}
  0x24   : > { %s4913_s2 = sld [smem:[#allocation42_spill]]  ;;  %s3212_s21 = scalar_lea.vmem %s407_s22, 64 }
  0x25   : > { %p3213_p2 = scmp.ne.s32.totalorder %s407_s22, %s3212_s21  ;;  %p3220_p1 = scmp.lt.s32.totalorder %s407_s22, %s407_s22 }
  0x26   : > { %p3221_p8 = scmp.lt.s32.totalorder %s3212_s21, %s3212_s21 }
  0x27   : > { %p3215_p5 = pnand %p3213_p2, %p3547_p7 }
  0x28   : > { %p3222_p9 = por %p3221_p8, %p3220_p1 }
  0x29   : > { %p3216_p4 = pneg %p3215_p5 }
  0x2a   : > { %2927 = dma.hbm_to_vmem [thread:$0]  (!%p3539_p6), %s4913_s2, 64, %s380_s18, [#allocation6]  }
  0x2b   : > { %p3223_p3 = pnand %p3222_p9, %p3216_p4 }
  0x2d   : > { %3226 = shalt.err (!%p3223_p3)
}
  0x2e   : > { %s4914_s5 = sld [smem:[#allocation44_spill]]  ;;  %s3238_s18 = scalar_lea.vmem %s3543_s24, 1024 }
  0x2f   : > { %p3239_p10 = scmp.ne.s32.totalorder %s3543_s24, %s3238_s18  ;;  %p3246_p13 = scmp.lt.s32.totalorder %s3543_s24, %s3543_s24 }
  0x30   : > { %p3247_p1 = scmp.lt.s32.totalorder %s3238_s18, %s3238_s18 }
  0x31   : > { %p3241_p11 = pnand %p3239_p10, %p3547_p7 }
  0x32   : > { %p3248_p4 = por %p3247_p1, %p3246_p13 }
  0x33   : > { %p3242_p12 = pneg %p3241_p11 }
  0x34   : > { %2933 = dma.hbm_to_vmem [thread:$0]  (!%p3539_p6), %s4914_s5, 64, %s407_s22, [#allocation9]  }
  0x35   : > { %p3249_p3 = pnand %p3248_p4, %p3242_p12 }
  0x37   : > { %3252 = shalt.err (!%p3249_p3)
}
  0x38   : > { %s3414_s28 = smov 512   ;;  %s3415_s17 = smov 32  }
  0x39   : > { %s4915_s4 = sld [smem:[#allocation43_spill]]  ;;  %s3416_s22 = smov [#allocation10]  }
  0x3a   : > { %s417_s27 = sshll.u32 %s3416_s22, 4  ;;  %s3417_s2 = smov [#allocation11]   ;;  %s418_s27 = int_to_ptr.vmem [resolvable:$true] %s417_s27 }
  0x3b   : > { %s431_s5 = sshll.u32 %s3417_s2, 4  ;;  %s3264_s14 = scalar_lea.vmem %s418_s27, 64  ;;  %s432_s5 = int_to_ptr.vmem [resolvable:$true] %s431_s5 }
  0x3c   : > { %p3265_p0 = scmp.ne.s32.totalorder %s418_s27, %s3264_s14  ;;  %p3272_p8 = scmp.lt.s32.totalorder %s418_s27, %s418_s27 }
  0x3d   : > { %p3273_p9 = scmp.lt.s32.totalorder %s3264_s14, %s3264_s14 }
  0x3e   : > { %p3267_p2 = pnand %p3265_p0, %p3547_p7 }
  0x3f   : > { %2930 = dma.hbm_to_vmem [thread:$0]  (!%p3539_p6), %s4915_s4, 1024, %s3543_s24, [#allocation6], %s3414_s28, %s3414_s28, %s3415_s17  }
  0x40   : > { %p3268_p5 = pneg %p3267_p2  ;;  %p3274_p10 = por %p3273_p9, %p3272_p8 }
  0x42   : > { %p3275_p11 = pnand %p3274_p10, %p3268_p5 }
  0x44   : > { %3278 = shalt.err (!%p3275_p11)
}
  0x45   : > { %s4916_s6 = sld [smem:[#allocation45_spill]]  ;;  %s3290_s24 = scalar_lea.vmem %s432_s5, 16 }
  0x46   : > { %p3291_p12 = scmp.ne.s32.totalorder %s432_s5, %s3290_s24  ;;  %s3297_s2 = scalar_lea.vmem %s432_s5, 32 }
  0x47   : > { %p3298_p4 = scmp.lt.s32.totalorder %s432_s5, %s432_s5  ;;  %p3299_p3 = scmp.lt.s32.totalorder %s3297_s2, %s3290_s24 }
  0x48   : > { %p3293_p13 = pnand %p3291_p12, %p3547_p7 }
  0x49   : > { %p3300_p0 = por %p3299_p3, %p3298_p4 }
  0x4a   : > { %p3294_p1 = pneg %p3293_p13 }
  0x4b   : > { %2936 = dma.hbm_to_vmem [thread:$0]  (!%p3539_p6), %s4916_s6, 64, %s418_s27, [#allocation9]  }
  0x4c   : > { %p3301_p2 = pnand %p3300_p0, %p3294_p1 }
  0x4e   : > { %3304 = shalt.err (!%p3301_p2)
}
  0x4f   : > { %s4917_s8 = sld [smem:[#allocation46_spill]]  ;;  %s2665_s26 = sadd.s32 4294967294, %s3409_s16  }
  0x50   : > { %s3593_s25 = sadd.s32 1, %s3409_s16   ;;  %s40_s17 = sadd.s32 1, %s3405_s15 }
  0x51   : > { %s37_s23 = ssub.s32 %s3409_s16, %s3593_s25  ;;  %p47_p7 = scmp.ne.s32.totalorder %s3405_s15, %s3401_s30 }
  0x52   : > { %p38_p5 = scmp.eq.s32.totalorder %s37_s23, 0  ;;  %p48_p8 = scmp.eq.s32.totalorder %s3409_s16, 0 }
  0x53   : > { %p53_p9 = scmp.ne.s32.totalorder %s3401_s30, %s3397_s29  ;;  %p350_p10 = scmp.eq.s32.totalorder %s3525_s19, 1 }
  0x54   : > { %s3605_s22 = scalar_select %p38_p5, %s3405_s15, %s40_s17  }
  0x55   : > { %2939 = dma.hbm_to_vmem [thread:$0]  (!%p3539_p6), %s4917_s8, 16, %s432_s5, [#allocation12]  }
  0x56   : > { %4918 = sst [smem:[#allocation20_spill]] %s3605_s22  ;;  %p49_p11 = por %p48_p8, %p47_p7 }
  0x57   : > { %p4919_p12 = scmp.eq.s32.totalorder %s3525_s19, 0  ;;  %p3613_p6 = por %p350_p10, %p47_p7 }
  0x58   : > { %p356_p1 = scmp.eq.s32.totalorder %s2665_s26, 1  ;;  %p2953_p4 = scmp.lt.s32.totalorder %s3409_s16, 2 }
  0x59   : > { %p3609_p13 = por %p4919_p12, %p53_p9  ;;  %s457_s18 = sand.u32 1, %s3405_s15  }
  0x5a   : > { %s4921_s5 = scalar_select %p3613_p6, 1, 0 }
  0x5b   : > { %s4920_s27 = scalar_select %p3609_p13, 1, 0 }
  0x5c   : > { %p3619_p3 = por %p356_p1, %p53_p9  ;;  %s2673_s24 = sshll.u32 %s457_s18, 4 }
  0x5d   : > { %s2784_s2 = sshll.u32 %s3409_s16, 8  ;;  %s461_s23 = scalar_lea.vmem [#allocation2], %s2673_s24 }
  0x5e   : > { %s4922_s21 = scalar_select %p3619_p3, 1, 0 }
  0x5f   : > { %s3627_s17 = scalar_lea.hbm %s4867_s0, %s2784_s2  ;;  %s468_s4 = sshll.u32 %s461_s23, 4  ;;  %s3633_s4 = int_to_ptr.vmem [resolvable:$true] %s468_s4 }
  0x60   : > { %p3629_p0 = pnand %p2953_p4, %p49_p11  ;;  %s3635_s6 = scalar_lea.sflag [#allocation3], %s457_s18 }
  0x61   : > { %s3305_s8 = scalar_lea.hbm %s3627_s17, 256  ;;  %s3310_s24 = scalar_lea.hbm %s4867_s0, 512 }
  0x62   : > { %p3306_p2 = scmp.ne.s32.totalorder %s3627_s17, %s3305_s8  ;;  %p3307_p7 = pneg %p3629_p0 }
  0x63   : > { %p3311_p9 = scmp.lt.s32.totalorder %s3627_s17, %s4867_s0  ;;  %p3312_p10 = scmp.lt.s32.totalorder %s3310_s24, %s3305_s8 }
  0x64   : > { %p3308_p5 = pnand %p3307_p7, %p3306_p2 }
  0x65   : > { %p3313_p11 = por %p3312_p10, %p3311_p9 }
  0x66   : > { %p3309_p8 = pneg %p3308_p5 }
  0x68   : > { %p3314_p12 = pnand %p3313_p11, %p3309_p8 }
  0x6a   : > { %3317 = shalt.err (!%p3314_p12)
}
  0x6b   : > { %s3318_s18 = scalar_lea.vmem %s3633_s4, 256  ;;  %s3418_s22 = smov [#allocation2]  }
  0x6c   : > { %p3319_p1 = scmp.ne.s32.totalorder %s3633_s4, %s3318_s18  ;;  %s3323_s15 = sshll.u32 %s3418_s22, 4  ;;  %s3324_s15 = int_to_ptr.vmem [resolvable:$false] %s3323_s15 }
  0x6d   : > { %s3325_s2 = scalar_lea.vmem %s3324_s15, 512  ;;  %p3326_p5 = scmp.lt.s32.totalorder %s3633_s4, %s3324_s15 }
  0x6e   : > { %p3321_p4 = pnand %p3319_p1, %p3307_p7  ;;  %p3327_p3 = scmp.lt.s32.totalorder %s3325_s2, %s3318_s18 }
  0x70   : > { %p3322_p2 = pneg %p3321_p4  ;;  %p3328_p6 = por %p3327_p3, %p3326_p5 }
  0x72   : > { %p3329_p13 = pnand %p3328_p6, %p3322_p2 }
  0x74   : > { %3332 = shalt.err (!%p3329_p13)
}
  0x75   : > { %s3419_s8 = smov 128   ;;  %s3420_s14 = smov 8  }
  0x76   : > { %2943 = dma.hbm_to_vmem [thread:$0]  (!%p3629_p0), %s3627_s17, 256, %s3633_s4, %s3635_s6, %s3419_s8, %s3419_s8, %s3420_s14  }
  0x77   : > { %p4924_p7 = scmp.ne.s32.totalorder %s4910_s20, 0 }
  0x79   : > { %480 = sbr.rel (%p4924_p7) target bundleno = 1371 (0x55b), region = 76 }
  0x7e   : > { %s3659_s22 = sand.u32 1, %s3401_s30   ;;  %p4925_p13 = scmp.ne.s32.totalorder %s4920_s27, 0 }
  0x7f   : > { %s2677_s15 = sshll.u32 %s3659_s22, 4  ;;  %s483_s24 = scalar_lea.sflag [#allocation3], %s3659_s22 }
  0x80   : > { %s3665_s28 = scalar_lea.vmem [#allocation2], %s2677_s15 }
  0x81   : > { %3376 = dma.done.wait (%p4925_p13), %s483_s24, 256  }
  0x82   : > { %3378 = vsyncadd (%p4925_p13), %s483_s24, 4294967040  ;;  %p4926_p6 = scmp.eq.s32.totalorder %s3525_s19, 0 }
  0x84   : > { %3380 = dma.done.wait (%p4926_p6), [#allocation6], 1088   ;;  %p4927_p3 = pmov %p4926_p6 }
  0x86   : > { %3382 = vsyncadd (%p4927_p3), [#allocation6], 4294966208  ;;  %p4928_p0 = pmov %p4927_p3 }
  0x88   : > { %3384 = dma.done.wait (%p4928_p0), [#allocation9], 128   ;;  %p4929_p8 = pmov %p4928_p0 }
  0x89   : > { %p4930_p9 = pmov %p4928_p0 }
  0x8a   : > { %3386 = vsyncadd (%p4929_p8), [#allocation9], 4294967168 }
  0x8b   : > { %3388 = dma.done.wait (%p4930_p9), [#allocation12], 16   ;;  %p4931_p10 = pmov %p4928_p0 }
  0x8c   : > { %v3421_v0 = vmov 0   ;;  %v3008_v1 = vld [vmem:[%s4868_s1 + $0xe4] ss:$16 sps:$4 sm:$0xff]   ;;  %v3010_v2 = vld [vmem:[%s4868_s1 + $0xec] ss:$16 sps:$4 sm:$0xff]   ;;  %v835_v36 = vlaneseq  ;;  %s3422_s23 = smov 32  }
  0x8d   : > { %3390 = vsyncadd (%p4931_p10), [#allocation12], 4294967280  ;;  %779 = vmatprep.mubr.bf16.mxu0 %v3421_v0  ;;  %822 = vmatprep.mubr.bf16.mxu1 %v3421_v0  ;;  %v3012_v3 = vld [vmem:[%s4868_s1 + $0xe0] ss:$16 sps:$4 sm:$0xff]   ;;  %v3013_v4 = vld [vmem:[%s4868_s1 + $0xe8] ss:$16 sps:$4 sm:$0xff]  }
  0x8e   : > { %747 = vmatprep.subr.bf16.mxu0 %v3008_v1  ;;  %790 = vmatprep.subr.bf16.mxu1 %v3010_v2  ;;  %v3014_v5 = vld [vmem:[%s4868_s1 + $0xc4] ss:$16 sps:$4 sm:$0xff]   ;;  %v3016_v6 = vld [vmem:[%s4868_s1 + $0xcc] ss:$16 sps:$4 sm:$0xff]   ;;  %v3018_v7 = vld [vmem:[%s4868_s1 + $0xc0] ss:$16 sps:$4 sm:$0xff]  }
  0x8f   : > { %748 = vmatpush1.bf16.msra.mxu0 %v3012_v3  ;;  %791 = vmatpush1.bf16.msra.mxu1 %v3013_v4  ;;  %v3019_v8 = vld [vmem:[%s4868_s1 + $0xc8] ss:$16 sps:$4 sm:$0xff]   ;;  %v3020_v9 = vld [vmem:[%s4868_s1 + $0xa4] ss:$16 sps:$4 sm:$0xff]   ;;  %v3022_v10 = vld [vmem:[%s4868_s1 + $0xac] ss:$16 sps:$4 sm:$0xff]  }
  0x90   : > { %749 = vmatprep.subr.bf16.mxu0 %v3014_v5  ;;  %792 = vmatprep.subr.bf16.mxu1 %v3016_v6  ;;  %v3024_v11 = vld [vmem:[%s4868_s1 + $0xa0] ss:$16 sps:$4 sm:$0xff]   ;;  %v3025_v12 = vld [vmem:[%s4868_s1 + $0xa8] ss:$16 sps:$4 sm:$0xff]   ;;  %v3026_v13 = vld [vmem:[%s4868_s1 + $0x84] ss:$16 sps:$4 sm:$0xff]  }
  0x91   : > { %v3028_v14 = vld [vmem:[%s4868_s1 + $0x8c] ss:$16 sps:$4 sm:$0xff]   ;;  %v3030_v15 = vld [vmem:[%s4868_s1 + $0x80] ss:$16 sps:$4 sm:$0xff]   ;;  %v3031_v16 = vld [vmem:[%s4868_s1 + $0x88] ss:$16 sps:$4 sm:$0xff]  }
  0x92   : > { %v3032_v17 = vld [vmem:[%s4868_s1 + $0x64] ss:$16 sps:$4 sm:$0xff]   ;;  %v3034_v18 = vld [vmem:[%s4868_s1 + $0x6c] ss:$16 sps:$4 sm:$0xff]   ;;  %v3036_v19 = vld [vmem:[%s4868_s1 + $0x60] ss:$16 sps:$4 sm:$0xff]  }
  0x93   : > { %750 = vmatpush1.bf16.msra.mxu0 %v3018_v7  ;;  %793 = vmatpush1.bf16.msra.mxu1 %v3019_v8  ;;  %v3037_v20 = vld [vmem:[%s4868_s1 + $0x68] ss:$16 sps:$4 sm:$0xff]   ;;  %v3038_v21 = vld [vmem:[%s4868_s1 + $0x44] ss:$16 sps:$4 sm:$0xff]   ;;  %v3040_v22 = vld [vmem:[%s4868_s1 + $0x4c] ss:$16 sps:$4 sm:$0xff]  }
  0x94   : > { %751 = vmatprep.subr.bf16.mxu0 %v3020_v9  ;;  %794 = vmatprep.subr.bf16.mxu1 %v3022_v10  ;;  %v3042_v23 = vld [vmem:[%s4868_s1 + $0x40] ss:$16 sps:$4 sm:$0xff]   ;;  %v3043_v24 = vld [vmem:[%s4868_s1 + $0x48] ss:$16 sps:$4 sm:$0xff]   ;;  %v3044_v25 = vld [vmem:[%s4868_s1 + $0x24] ss:$16 sps:$4 sm:$0xff]  }
  0x95   : > { %v3046_v26 = vld [vmem:[%s4868_s1 + $0x2c] ss:$16 sps:$4 sm:$0xff]   ;;  %v3048_v27 = vld [vmem:[%s4868_s1 + $0x20] ss:$16 sps:$4 sm:$0xff]   ;;  %v3049_v28 = vld [vmem:[%s4868_s1 + $0x28] ss:$16 sps:$4 sm:$0xff]  }
  0x96   : > { %v3050_v29 = vld [vmem:[%s4868_s1 + $0x4] ss:$16 sps:$4 sm:$0xff]   ;;  %v3052_v30 = vld [vmem:[%s4868_s1 + $0xc] ss:$16 sps:$4 sm:$0xff]   ;;  %v3054_v31 = vld [vmem:[%s4868_s1] ss:$16 sps:$4 sm:$0xff]  }
  0x97   : > { %752 = vmatpush1.bf16.msra.mxu0 %v3024_v11  ;;  %795 = vmatpush1.bf16.msra.mxu1 %v3025_v12  ;;  %v3055_v32 = vld [vmem:[%s4868_s1 + $0x8] ss:$16 sps:$4 sm:$0xff]   ;;  %v552_v33 = vld [vmem:[%s3665_s28] sm:$0xff]  ;;  %v3782_v37 = vshrl.u32 %v835_v36, 7  ;;  %s3423_s18 = smov 96   ;;  %vm1967_vm6 = vcmask 1041408  }
  0x98   : > { %753 = vmatprep.subr.bf16.mxu0 %v3026_v13  ;;  %796 = vmatprep.subr.bf16.mxu1 %v3028_v14  ;;  %v553_v34 = vld [vmem:[%s3665_s28 + $0x8] sm:$0xff]  ;;  %v833_v40 = vld [vmem:[#allocation5] sm:$0xf]  ;;  %vm1963_vm7 = vcmask 15360   ;;  %s2785_s17 = sshll.u32 %s3525_s19, 8  ;;  %s550_s26 = scalar_lea.vmem [#allocation13], %s2677_s15 }
  0x99   : > { %v554_v35 = vpack.c.bf16 %v553_v34, %v552_v33  ;;  %4932 = vst [vmem:[#allocation21_spill] sm:$0xff] %v3782_v37  ;;  %v3785_v38 = vsub.s32 0, %v3782_v37  ;;  %v3788_v39 = vsub.s32 2, %v3782_v37  ;;  %v3791_v41 = vsub.s32 1, %v3782_v37  ;;  %v863_v43 = vld [vmem:[%s4870_s3] sm:$0xf] }
  0x9a   : > { %v3794_v42 = vsub.s32 3, %v3782_v37  ;;  %vm960_vm0 = vcmp.lt.s32.totalorder %v3782_v37, 1  ;;  %vm1362_vm1 = vcmp.lt.s32.totalorder %v3782_v37, 7  ;;  %vm1137_vm4 = vcmp.ge.s32.totalorder %v3782_v37, 1  ;;  %s4976_s8 = sld [smem:[#allocation47_spill]]  ;;  %s2531_s24 = scalar_lea.sflag [#allocation4], %s3659_s22 }
  0x9b   : > { %754 = vmatpush1.bf16.msra.mxu0 %v3030_v15  ;;  %797 = vmatpush1.bf16.msra.mxu1 %v3031_v16  ;;  %4933 = vst [vmem:[#allocation22_spill] sm:$0xff] %v3791_v41  ;;  %v838_v44 = vrot.slane %v833_v40, %v3785_v38  ;;  %v846_v45 = vrot.slane %v833_v40, %v3788_v39  ;;  %p4977_p12 = scmp.ne.s32.totalorder %s4921_s5, 0  ;;  %s3426_s15 = smov [#allocation13]  }
  0x9c   : > { %755 = vmatprep.subr.bf16.mxu0 %v3032_v17  ;;  %798 = vmatprep.subr.bf16.mxu1 %v3034_v18  ;;  %v868_v46 = vrot.slane %v863_v43, %v3785_v38  ;;  %v876_v47 = vrot.slane %v863_v43, %v3788_v39  ;;  %v842_v48 = vrot.slane %v833_v40, %v3791_v41  ;;  %s3337_s4 = sshll.u32 %s3426_s15, 4  ;;  %s3338_s4 = int_to_ptr.vmem [resolvable:$false] %s3337_s4 }
  0x9d   : > { %v850_v49 = vrot.slane %v833_v40, %v3794_v42  ;;  %v872_v54 = vrot.slane %v863_v43, %v3791_v41  ;;  %v880_v55 = vrot.slane %v863_v43, %v3794_v42  ;;  %s3339_s6 = scalar_lea.vmem %s3338_s4, 512 }
  0x9f   : > { %756 = vmatpush1.bf16.msra.mxu0 %v3036_v19  ;;  %799 = vmatpush1.bf16.msra.mxu1 %v3037_v20 }
  0xa0   : > { %757 = vmatprep.subr.bf16.mxu0 %v3038_v21  ;;  %800 = vmatprep.subr.bf16.mxu1 %v3040_v22  ;;  %s4821_s14 = scalar_lea.hbm %s4976_s8, %s2785_s17 }
  0xa3   : > { %758 = vmatpush1.bf16.msra.mxu0 %v3042_v23  ;;  %801 = vmatpush1.bf16.msra.mxu1 %v3043_v24 }
  0xa4   : > { %759 = vmatprep.subr.bf16.mxu0 %v3044_v25  ;;  %802 = vmatprep.subr.bf16.mxu1 %v3046_v26 }
  0xa7   : > { %760 = vmatpush1.bf16.msra.mxu0 %v3048_v27  ;;  %803 = vmatpush1.bf16.msra.mxu1 %v3049_v28 }
  0xa8   : > { %761 = vmatprep.subr.bf16.mxu0 %v3050_v29  ;;  %804 = vmatprep.subr.bf16.mxu1 %v3052_v30 }
  0xab   : > { %762 = vmatpush1.bf16.msra.mxu0 %v3054_v31  ;;  %805 = vmatpush1.bf16.msra.mxu1 %v3055_v32 }
  0xae   : > { %780 = vmatmul.mubr.bf16.vlgmr.msra.gmra.mxu0 %v554_v35  ;;  %823 = vmatmul.mubr.bf16.vlgmr.msra.gmra.mxu1 %v554_v35 }
 0x16e   : > { %v781_v50 = vpop.f32.mrf.mxu0  ;;  %v824_v51 = vpop.f32.mrf.mxu1 }
 0x16f   : > { %v855_v52 = vmul.f32 %v838_v44, %v781_v50  ;;  %v857_v53 = vmul.f32 %v846_v45, %v824_v51 }
 0x170   : > { %v783_v56 = vpop.f32.mrf.mxu0  ;;  %v826_v57 = vpop.f32.mrf.mxu1 }
 0x171   : > { %v885_v58 = vadd.f32 %v868_v46, %v855_v52  ;;  %v887_v59 = vadd.f32 %v876_v47, %v857_v53  ;;  %v856_v60 = vmul.f32 %v842_v48, %v783_v56  ;;  %v858_v61 = vmul.f32 %v850_v49, %v826_v57 }
 0x172   : > { %v785_v62 = vpop.f32.mrf.mxu0  ;;  %v828_v63 = vpop.f32.mrf.mxu1 }
 0x173   : > { %v2716_v0 = vmul.f32 -1.442695, %v885_v58  ;;  %v2718_v1 = vmul.f32 -1.442695, %v887_v59  ;;  %v886_v2 = vadd.f32 %v872_v54, %v856_v60  ;;  %v888_v3 = vadd.f32 %v880_v55, %v858_v61 }
 0x174   : > { %v859_v4 = vmul.f32 %v838_v44, %v785_v62  ;;  %v861_v5 = vmul.f32 %v846_v45, %v828_v63  ;;  %v787_v8 = vpop.f32.mrf.mxu0  ;;  %v830_v12 = vpop.f32.mrf.mxu1 }
 0x175   : > { %3089 = vpow2.f32 %v2716_v0  ;;  %v2717_v6 = vmul.f32 -1.442695, %v886_v2  ;;  %v2719_v7 = vmul.f32 -1.442695, %v888_v3  ;;  %v860_v11 = vmul.f32 %v842_v48, %v787_v8 }
 0x176   : > { %3091 = vpow2.f32 %v2718_v1  ;;  %v891_v9 = vadd.f32 %v876_v47, %v861_v5  ;;  %v889_v10 = vadd.f32 %v868_v46, %v859_v4  ;;  %v862_v16 = vmul.f32 %v850_v49, %v830_v12 }
 0x177   : > { %3093 = vpow2.f32 %v2717_v6  ;;  %v890_v15 = vadd.f32 %v872_v54, %v860_v11 }
 0x178   : > { %3095 = vpow2.f32 %v2719_v7  ;;  %v2722_v13 = vmul.f32 -1.442695, %v891_v9  ;;  %v2720_v14 = vmul.f32 -1.442695, %v889_v10  ;;  %v892_v18 = vadd.f32 %v880_v55, %v862_v16 }
 0x179   : > { %v2721_v17 = vmul.f32 -1.442695, %v890_v15 }
 0x17a   : > { %3097 = vpow2.f32 %v2722_v13  ;;  %v2723_v24 = vmul.f32 -1.442695, %v892_v18 }
 0x17b   : > { %3099 = vpow2.f32 %v2720_v14 }
 0x17c   : > { %3101 = vpow2.f32 %v2721_v17 }
 0x182   : > { %v3090_v19 = vpop.eup %3089 }
 0x183   : > { %v3092_v20 = vpop.eup %3091  ;;  %v917_v21 = vadd.f32 1.0, %v3090_v19 }
 0x184   : > { %v3094_v22 = vpop.eup %3093  ;;  %v919_v23 = vadd.f32 1.0, %v3092_v20 }
 0x185   : > { %v3096_v25 = vpop.eup %3095  ;;  %3103 = vrcp.f32 %v917_v21  ;;  %v918_v26 = vadd.f32 1.0, %v3094_v22 }
 0x186   : > { %3105 = vrcp.f32 %v919_v23  ;;  %v920_v27 = vadd.f32 1.0, %v3096_v25 }
 0x187   : > { %3107 = vrcp.f32 %v918_v26  ;;  %v3098_v28 = vpop.eup %3097  ;;  %v4002_v26 = vand.u32 127, %v835_v36  ;;  %v1773_v36 = vld [vmem:[%s4874_s7 + $0x1f8] sm:$0xff] }
 0x188   : > { %3109 = vpow2.f32 %v2723_v24  ;;  %v3100_v29 = vpop.eup %3099  ;;  %v923_v30 = vadd.f32 1.0, %v3098_v28  ;;  %v1188_v28 = vld [vmem:[#allocation7 + $0x3] ss:$8 sm:$0xf]  ;;  %2821 = vmatprep.subr.mxu1 %v1773_v36 }
 0x189   : > { %3111 = vrcp.f32 %v920_v27  ;;  %v921_v31 = vadd.f32 1.0, %v3100_v29  ;;  %v3102_v32 = vpop.eup %3101  ;;  %v1227_v27 = vld [vmem:[#allocation7 + $0x4] ss:$8 sm:$0xf]  ;;  %vm987_vm2 = vcmp.lt.s32.totalorder %v4002_v26, 32  ;;  %vm1089_vm3 = vcmp.lt.s32.totalorder %v4002_v26, 96 }
 0x18a   : > { %3113 = vrcp.f32 %v923_v30  ;;  %v922_v44 = vadd.f32 1.0, %v3102_v32  ;;  %v1741_v30 = vld [vmem:[%s4874_s7 + $0xf8] sm:$0xff]  ;;  %v4008_v32 = vrot.slane %v1227_v27, %v3788_v39 }
 0x18b   : > { %3115 = vrcp.f32 %v921_v31  ;;  %2786 = vmatprep.subr.mxu0 %v1741_v30 }
 0x18c   : > { %3117 = vrcp.f32 %v922_v44  ;;  %v4024_v44 = vrot.slane %v1227_v27, %v3791_v41 }
 0x192   : > { %v3104_v33 = vpop.eup %3103 }
 0x193   : > { %v3106_v34 = vpop.eup %3105  ;;  %v3807_v35 = vmul.f32 %v3104_v33, %v885_v58  ;;  %v1725_v33 = vld [vmem:[%s4874_s7 + $0x78] sm:$0xff] }
 0x194   : > { %v3108_v40 = vpop.eup %3107  ;;  %v3809_v43 = vmul.f32 %v3106_v34, %v887_v59  ;;  %v4018_v34 = vrot.slane %v1188_v28, %v3791_v41  ;;  %2787 = vmatpush3.msra.mxu0 %v1725_v33 }
 0x195   : > { %v3110_v45 = vpop.eup %3109  ;;  %1163 = vrot.lane.b32.xlu0 %v3807_v35, %s3422_s23  ;;  %v3815_v46 = vmul.f32 %v3108_v40, %v886_v2  ;;  %v952_v59 = vrot.slane %v3807_v35, 7  ;;  %v1354_v0 = vrot.slane %v3807_v35, 1  ;;  %v4021_v40 = vrot.slane %v1188_v28, %v3788_v39 }
 0x196   : > { %1171 = vrot.lane.b32.xlu1 %v3809_v43, %s3422_s23  ;;  %v3112_v47 = vpop.eup %3111  ;;  %v924_v48 = vadd.f32 1.0, %v3110_v45  ;;  %v954_v1 = vrot.slane %v3809_v43, 7  ;;  %v1356_v5 = vrot.slane %v3809_v43, 1  ;;  %v1740_v45 = vld [vmem:[%s4874_s7 + $0xf0] sm:$0xff] }
 0x197   : > { %v3821_v49 = vmul.f32 %v3112_v47, %v888_v3  ;;  %v3114_v50 = vpop.eup %3113  ;;  %v1355_v21 = vrot.slane %v3815_v46, 1  ;;  %v1757_v47 = vld [vmem:[%s4874_s7 + $0x178] sm:$0xff]  ;;  %2788 = vmatprep.subr.mxu0 %v1740_v45  ;;  %v1754_v45 = vld [vmem:[%s4874_s7 + $0x160] sm:$0xff] }
 0x198   : > { %3119 = vrcp.f32 %v924_v48  ;;  %v3116_v51 = vpop.eup %3115  ;;  %v3831_v52 = vmul.f32 %v3114_v50, %v891_v9  ;;  %v953_v9 = vrot.slane %v3815_v46, 7  ;;  %v4033_v48 = vrot.slane %v1227_v27, %v3785_v38  ;;  %2822 = vmatpush3.msra.mxu1 %v1757_v47  ;;  %v1724_v50 = vld [vmem:[%s4874_s7 + $0x70] sm:$0xff] }
 0x199   : > { %1167 = vrot.lane.b32.xlu0 %v3815_v46, %s3422_s23  ;;  %v3833_v53 = vmul.f32 %v3116_v51, %v889_v10  ;;  %v3118_v54 = vpop.eup %3117  ;;  %v1357_v20 = vrot.slane %v3821_v49, 1  ;;  %v1772_v51 = vld [vmem:[%s4874_s7 + $0x1f0] sm:$0xff]  ;;  %2789 = vmatpush3.msra.mxu0 %v1724_v50 }
 0x19a   : > { %1273 = vrot.lane.b32.xlu1 %v3809_v43, %s3423_s18  ;;  %v3839_v55 = vmul.f32 %v3118_v54, %v890_v15  ;;  %v958_v63 = vrot.slane %v3831_v52, 7  ;;  %v1360_v4 = vrot.slane %v3831_v52, 1  ;;  %v955_v15 = vrot.slane %v3821_v49, 7  ;;  %2823 = vmatprep.subr.mxu1 %v1772_v51 }
 0x19b   : > { %v956_v58 = vrot.slane %v3833_v53, 7  ;;  %v1358_v61 = vrot.slane %v3833_v53, 1 }
 0x19c   : > { %v3883_v3 = vsel %vm960_vm0, %v958_v63, %v954_v1  ;;  %v3899_v6 = vsel %vm1362_vm1, %v1356_v5, %v1360_v4  ;;  %v3905_v7 = vsel %vm960_vm0, %v954_v1, %v958_v63  ;;  %v957_v8 = vrot.slane %v3839_v55, 7  ;;  %v1756_v63 = vld [vmem:[%s4874_s7 + $0x170] sm:$0xff] }
 0x19d   : > { %1175 = vrot.lane.b32.xlu0 %v3821_v49, %s3422_s23  ;;  %v3860_v60 = vsel %vm960_vm0, %v956_v58, %v952_v59  ;;  %v3867_v62 = vsel %vm960_vm0, %v952_v59, %v956_v58  ;;  %v3877_v2 = vsel %vm1362_vm1, %v1358_v61, %v1354_v0  ;;  %v3921_v11 = vsel %vm1362_vm1, %v1354_v0, %v1358_v61  ;;  %v1739_v61 = vld [vmem:[%s4874_s7 + $0xe8] sm:$0xff] }
 0x19e   : > { %1265 = vrot.lane.b32.xlu1 %v3807_v35, %s3423_s18  ;;  %v3917_v10 = vsel %vm960_vm0, %v957_v8, %v953_v9  ;;  %v3929_v12 = vsel %vm960_vm0, %v953_v9, %v957_v8  ;;  %v3933_v13 = vsel %vm1362_vm1, %v1360_v4, %v1356_v5  ;;  %v1359_v19 = vrot.slane %v3839_v55, 1  ;;  %2790 = vmatprep.subr.mxu0 %v1739_v61  ;;  %v1723_v8 = vld [vmem:[%s4874_s7 + $0x68] sm:$0xff]  ;;  %v1769_v61 = vld [vmem:[%s4874_s7 + $0x1d8] sm:$0xff] }
 0x19f   : > { %v4045_v58 = vrot.slane %v1188_v28, %v3794_v42  ;;  %v4048_v59 = vrot.slane %v1227_v27, %v3794_v42  ;;  %v1251_v1 = vmul.f32 %v4008_v32, %v3809_v43  ;;  %2824 = vmatpush3.msra.mxu1 %v1756_v63  ;;  %v1771_v9 = vld [vmem:[%s4874_s7 + $0x1e8] sm:$0xff]  ;;  %2791 = vmatpush3.msra.mxu0 %v1723_v8  ;;  %v1770_v27 = vld [vmem:[%s4874_s7 + $0x1e0] sm:$0xff] }
 0x1a0   : > { %v3967_v23 = vsel %vm1362_vm1, %v1359_v19, %v1355_v21  ;;  %v3987_v25 = vsel %vm1362_vm1, %v1355_v21, %v1359_v19  ;;  %2825 = vmatprep.subr.mxu1 %v1771_v9  ;;  %v1738_v19 = vld [vmem:[%s4874_s7 + $0xe0] sm:$0xff]  ;;  %v1249_v21 = vmul.f32 %v4033_v48, %v3807_v35  ;;  %v1737_v35 = vld [vmem:[%s4874_s7 + $0xd8] sm:$0xff]  ;;  %v1720_v9 = vld [vmem:[%s4874_s7 + $0x50] sm:$0xff] }
 0x1a1   : > { %1277 = vrot.lane.b32.xlu0 %v3821_v49, %s3423_s18  ;;  %2792 = vmatprep.subr.mxu0 %v1738_v19  ;;  %v1252_v33 = vmul.f32 %v4048_v59, %v3821_v49 }
 0x1a2   : > { %1269 = vrot.lane.b32.xlu1 %v3815_v46, %s3423_s18 }
 0x1a5   : > { %1173 = vrot.lane.b32.xlu0 %v3831_v52, %s3422_s23  ;;  %v3120_v56 = vpop.eup %3119 }
 0x1a6   : > { %1165 = vrot.lane.b32.xlu1 %v3833_v53, %s3422_s23  ;;  %v3845_v57 = vmul.f32 %v3120_v56, %v892_v18  ;;  %v4042_v56 = vrot.slane %v1188_v28, %v3785_v38 }
 0x1a8   : > { %v959_v14 = vrot.slane %v3845_v57, 7  ;;  %v1361_v17 = vrot.slane %v3845_v57, 1 }
 0x1a9   : > { %1275 = vrot.lane.b32.xlu0 %v3831_v52, %s3423_s18 }
 0x1aa   : > { %1169 = vrot.lane.b32.xlu1 %v3839_v55, %s3422_s23  ;;  %v3947_v16 = vsel %vm960_vm0, %v955_v15, %v959_v14  ;;  %v3952_v18 = vsel %vm960_vm0, %v959_v14, %v955_v15  ;;  %v3963_v22 = vsel %vm1362_vm1, %v1361_v17, %v1357_v20  ;;  %v3975_v24 = vsel %vm1362_vm1, %v1357_v20, %v1361_v17  ;;  %v1290_v17 = vld [vmem:[#allocation7 + $0x5] ss:$8 sm:$0xf] }
 0x1ab   : > { %v1250_v15 = vmul.f32 %v4024_v44, %v3815_v46  ;;  %v1755_v20 = vld [vmem:[%s4874_s7 + $0x168] sm:$0xff]  ;;  %v1722_v46 = vld [vmem:[%s4874_s7 + $0x60] sm:$0xff]  ;;  %v4103_v49 = vrot.slane %v1290_v17, %v3788_v39  ;;  %v4127_v8 = vrot.slane %v1290_v17, %v3791_v41 }
 0x1ac   : > { %2826 = vmatpush3.msra.mxu1 %v1755_v20  ;;  %2793 = vmatpush3.msra.mxu0 %v1722_v46  ;;  %v1719_v46 = vld [vmem:[%s4874_s7 + $0x48] sm:$0xff] }
 0x1ad   : > { %1267 = vrot.lane.b32.xlu0 %v3833_v53, %s3423_s18  ;;  %2827 = vmatprep.subr.mxu1 %v1770_v27  ;;  %v1767_v27 = vld [vmem:[%s4874_s7 + $0x1c8] sm:$0xff] }
 0x1ae   : > { %1177 = vrot.lane.b32.xlu1 %v3845_v57, %s3422_s23  ;;  %2794 = vmatprep.subr.mxu0 %v1737_v35  ;;  %v1734_v35 = vld [vmem:[%s4874_s7 + $0xc0] sm:$0xff] }
 0x1af   : > { %2828 = vmatpush3.msra.mxu1 %v1754_v45  ;;  %v1751_v45 = vld [vmem:[%s4874_s7 + $0x148] sm:$0xff] }
 0x1b0   : > { %2829 = vmatprep.subr.mxu1 %v1769_v61 }
 0x1b1   : > { %1271 = vrot.lane.b32.xlu0 %v3839_v55, %s3423_s18 }
 0x1b2   : > { %1279 = vrot.lane.b32.xlu1 %v3845_v57, %s3423_s18 }
 0x1b5   : > { %969 = vrot.lane.b32.xlu0 %v3860_v60, %s3422_s23 }
 0x1b6   : > { %971 = vrot.lane.b32.xlu1 %v3867_v62, %s3422_s23 }
 0x1b9   : > { %1373 = vrot.lane.b32.xlu0 %v3877_v2, %s3422_s23 }
 0x1ba   : > { %977 = vrot.lane.b32.xlu1 %v3883_v3, %s3422_s23 }
 0x1bd   : > { %1075 = vrot.lane.b32.xlu0 %v3867_v62, %s3423_s18 }
 0x1be   : > { %1081 = vrot.lane.b32.xlu1 %v3883_v3, %s3423_s18 }
 0x1c1   : > { %1475 = vrot.lane.b32.xlu0 %v3877_v2, %s3423_s18 }
 0x1c2   : > { %1073 = vrot.lane.b32.xlu1 %v3860_v60, %s3423_s18 }
 0x1c5   : > { %1379 = vrot.lane.b32.xlu0 %v3899_v6, %s3422_s23 }
 0x1c6   : > { %979 = vrot.lane.b32.xlu1 %v3905_v7, %s3422_s23 }
 0x1c9   : > { %1481 = vrot.lane.b32.xlu0 %v3899_v6, %s3423_s18 }
 0x1ca   : > { %1083 = vrot.lane.b32.xlu1 %v3905_v7, %s3423_s18 }
 0x1cd   : > { %973 = vrot.lane.b32.xlu0 %v3917_v10, %s3422_s23 }
 0x1ce   : > { %1371 = vrot.lane.b32.xlu1 %v3921_v11, %s3422_s23 }
 0x1d1   : > { %975 = vrot.lane.b32.xlu0 %v3929_v12, %s3422_s23 }
 0x1d2   : > { %1381 = vrot.lane.b32.xlu1 %v3933_v13, %s3422_s23 }
 0x1d5   : > { %1077 = vrot.lane.b32.xlu0 %v3917_v10, %s3423_s18 }
 0x1d6   : > { %1483 = vrot.lane.b32.xlu1 %v3933_v13, %s3423_s18 }
 0x1d9   : > { %983 = vrot.lane.b32.xlu0 %v3947_v16, %s3422_s23 }
 0x1da   : > { %981 = vrot.lane.b32.xlu1 %v3952_v18, %s3422_s23 }
 0x1dd   : > { %1385 = vrot.lane.b32.xlu0 %v3963_v22, %s3422_s23 }
 0x1de   : > { %1377 = vrot.lane.b32.xlu1 %v3967_v23, %s3422_s23 }
 0x1e1   : > { %1079 = vrot.lane.b32.xlu0 %v3929_v12, %s3423_s18 }
 0x1e2   : > { %1383 = vrot.lane.b32.xlu1 %v3975_v24, %s3422_s23 }
 0x1e5   : > { %1085 = vrot.lane.b32.xlu0 %v3952_v18, %s3423_s18 }
 0x1e6   : > { %1087 = vrot.lane.b32.xlu1 %v3947_v16, %s3423_s18 }
 0x1e9   : > { %1375 = vrot.lane.b32.xlu0 %v3987_v25, %s3422_s23  ;;  %s2544_s23 = sshll.u32 %s550_s26, 4  ;;  %s4823_s23 = int_to_ptr.vmem [resolvable:$true] %s2544_s23 }
 0x1ea   : > { %1477 = vrot.lane.b32.xlu1 %v3987_v25, %s3423_s18  ;;  %s3333_s19 = scalar_lea.vmem %s4823_s23, 256  ;;  %p3340_p2 = scmp.lt.s32.totalorder %s4823_s23, %s3338_s4 }
 0x1eb   : > { %p3334_p11 = scmp.ne.s32.totalorder %s4823_s23, %s3333_s19  ;;  %p3341_p5 = scmp.lt.s32.totalorder %s3339_s6, %s3333_s19 }
 0x1ed   : > { %1479 = vrot.lane.b32.xlu0 %v3967_v23, %s3423_s18  ;;  %p3335_p1 = pnand %p3334_p11, %p4977_p12  ;;  %p3342_p7 = por %p3341_p5, %p3340_p2 }
 0x1ee   : > { %1487 = vrot.lane.b32.xlu1 %v3963_v22, %s3423_s18 }
 0x1ef   : > { %p3336_p4 = pneg %p3335_p1 }
 0x1f1   : > { %1473 = vrot.lane.b32.xlu0 %v3921_v11, %s3423_s18  ;;  %p3343_p13 = pnand %p3342_p7, %p3336_p4 }
 0x1f2   : > { %1485 = vrot.lane.b32.xlu1 %v3975_v24, %s3423_s18 }
 0x207   : > { %v1164_v29 = vpop.permute.xlu0 %1163 }
 0x208   : > { %v1172_v31 = vpop.permute.xlu1 %1171 }
 0x20b   : > { %v1168_v54 = vpop.permute.xlu0 %1167 }
 0x20c   : > { %v4056_v0 = vpop.permute.xlu1 %1273  ;;  %v1181_v4 = vsel %vm987_vm2, %v1168_v54, %v1172_v31  ;;  %v1183_v5 = vsel %vm987_vm2, %v1164_v29, %v1168_v54  ;;  %v1721_v54 = vld [vmem:[%s4874_s7 + $0x58] sm:$0xff] }
 0x20d   : > { %v1211_v14 = vmul.f32 %v4018_v34, %v1183_v5  ;;  %v1212_v43 = vmul.f32 %v4021_v40, %v1181_v4  ;;  %2795 = vmatpush3.msra.mxu0 %v1721_v54  ;;  %v1753_v4 = vld [vmem:[%s4874_s7 + $0x158] sm:$0xff]  ;;  %v4124_v5 = vrot.slane %v1290_v17, %v3785_v38 }
 0x20e   : > { %2830 = vmatpush3.msra.mxu1 %v1753_v4 }
 0x20f   : > { %v4088_v28 = vadd.f32 %v1250_v15, %v1211_v14  ;;  %v1259_v30 = vadd.f32 %v1251_v1, %v1212_v43  ;;  %v1176_v36 = vpop.permute.xlu0 %1175  ;;  %v1736_v1 = vld [vmem:[%s4874_s7 + $0xd0] sm:$0xff]  ;;  %v1735_v43 = vld [vmem:[%s4874_s7 + $0xc8] sm:$0xff] }
 0x210   : > { %v1266_v47 = vpop.permute.xlu1 %1265  ;;  %v1179_v50 = vsel %vm987_vm2, %v1172_v31, %v1176_v36  ;;  %v1185_v51 = vsel %vm987_vm2, %v1176_v36, %v1164_v29  ;;  %v4115_v29 = vrot.slane %v1290_v17, %v3794_v42  ;;  %2796 = vmatprep.subr.mxu0 %v1736_v1  ;;  %v1768_v14 = vld [vmem:[%s4874_s7 + $0x1d0] sm:$0xff]  ;;  %v1733_v1 = vld [vmem:[%s4874_s7 + $0xb8] sm:$0xff] }
 0x211   : > { %v1210_v63 = vmul.f32 %v4042_v56, %v1185_v51  ;;  %v1213_v31 = vmul.f32 %v4045_v58, %v1179_v50  ;;  %2797 = vmatpush3.msra.mxu0 %v1720_v9  ;;  %2831 = vmatprep.subr.mxu1 %v1768_v14  ;;  %v1752_v17 = vld [vmem:[%s4874_s7 + $0x150] sm:$0xff]  ;;  %v1718_v50 = vld [vmem:[%s4874_s7 + $0x40] sm:$0xff]  ;;  %v1717_v9 = vld [vmem:[%s4874_s7 + $0x38] sm:$0xff] }
 0x212   : > { %2798 = vmatprep.subr.mxu0 %v1735_v43  ;;  %2832 = vmatpush3.msra.mxu1 %v1752_v17  ;;  %v1765_v17 = vld [vmem:[%s4874_s7 + $0x1b8] sm:$0xff] }
 0x213   : > { %v1257_v15 = vadd.f32 %v1249_v21, %v1210_v63  ;;  %v1260_v19 = vadd.f32 %v1252_v33, %v1213_v31  ;;  %v1278_v20 = vpop.permute.xlu0 %1277  ;;  %2799 = vmatpush3.msra.mxu0 %v1719_v46  ;;  %v1766_v31 = vld [vmem:[%s4874_s7 + $0x1c0] sm:$0xff]  ;;  %2833 = vmatprep.subr.mxu1 %v1767_v27  ;;  %v1732_v46 = vld [vmem:[%s4874_s7 + $0xb0] sm:$0xff] }
 0x214   : > { %v1270_v36 = vpop.permute.xlu1 %1269  ;;  %v1281_v21 = vsel %vm1089_vm3, %v4056_v0, %v1278_v20  ;;  %v1287_v33 = vsel %vm1089_vm3, %v1278_v20, %v1266_v47  ;;  %2800 = vmatprep.subr.mxu0 %v1734_v35  ;;  %2834 = vmatpush3.msra.mxu1 %v1751_v45  ;;  %v1715_v35 = vld [vmem:[%s4874_s7 + $0x28] sm:$0xff] }
 0x215   : > { %v1283_v51 = vsel %vm1089_vm3, %v1270_v36, %v4056_v0  ;;  %v1285_v54 = vsel %vm1089_vm3, %v1266_v47, %v1270_v36  ;;  %v1314_v61 = vmul.f32 %v4103_v49, %v1281_v21  ;;  %v1315_v63 = vmul.f32 %v4115_v29, %v1287_v33  ;;  %v1750_v47 = vld [vmem:[%s4874_s7 + $0x140] sm:$0xff]  ;;  %2801 = vmatpush3.msra.mxu0 %v1718_v50  ;;  %v1716_v21 = vld [vmem:[%s4874_s7 + $0x30] sm:$0xff]  ;;  %v1763_v50 = vld [vmem:[%s4874_s7 + $0x1a8] sm:$0xff] }
 0x216   : > { %v1312_v4 = vmul.f32 %v4124_v5, %v1285_v54  ;;  %v1313_v0 = vmul.f32 %v4127_v8, %v1283_v51  ;;  %2835 = vmatprep.subr.mxu1 %v1766_v31  ;;  %2802 = vmatprep.subr.mxu0 %v1733_v1  ;;  %v1748_v33 = vld [vmem:[%s4874_s7 + $0x130] sm:$0xff]  ;;  %v1730_v51 = vld [vmem:[%s4874_s7 + $0xa0] sm:$0xff]  ;;  %v1255_v31 = vmul.f32 %v4008_v32, %v3831_v52 }
 0x217   : > { %v4182_v14 = vadd.f32 %v1314_v61, %v1259_v30  ;;  %v4184_v43 = vadd.f32 %v1315_v63, %v1260_v19  ;;  %v1174_v20 = vpop.permute.xlu0 %1173  ;;  %v1749_v19 = vld [vmem:[%s4874_s7 + $0x138] sm:$0xff]  ;;  %2836 = vmatpush3.msra.mxu1 %v1750_v47  ;;  %2803 = vmatpush3.msra.mxu0 %v1717_v9  ;;  %v1747_v61 = vld [vmem:[%s4874_s7 + $0x128] sm:$0xff]  ;;  %v1714_v63 = vld [vmem:[%s4874_s7 + $0x20] sm:$0xff]  ;;  %v1254_v32 = vmul.f32 %v4024_v44, %v3839_v55 }
 0x218   : > { %v4192_v27 = vadd.f32 %v1312_v4, %v1257_v15  ;;  %v4195_v36 = vadd.f32 %v1313_v0, %v4088_v28  ;;  %v1166_v30 = vpop.permute.xlu1 %1165  ;;  %v1764_v15 = vld [vmem:[%s4874_s7 + $0x1b0] sm:$0xff]  ;;  %v1731_v28 = vld [vmem:[%s4874_s7 + $0xa8] sm:$0xff]  ;;  %2837 = vmatprep.subr.mxu1 %v1765_v17  ;;  %2804 = vmatprep.subr.mxu0 %v1732_v46  ;;  %v1762_v0 = vld [vmem:[%s4874_s7 + $0x1a0] sm:$0xff] }
 0x219   : > { %4934 = vst [vmem:[#allocation23_spill] sm:$0xff] %v4182_v14  ;;  %4935 = vst [vmem:[#allocation24_spill] sm:$0xff] %v4184_v43  ;;  %2838 = vmatpush3.msra.mxu1 %v1749_v19  ;;  %2805 = vmatpush3.msra.mxu0 %v1716_v21  ;;  %v1729_v47 = vld [vmem:[%s4874_s7 + $0x98] sm:$0xff]  ;;  %v1746_v17 = vld [vmem:[%s4874_s7 + $0x120] sm:$0xff] }
 0x21a   : > { %2839 = vmatprep.subr.mxu1 %v1764_v15  ;;  %2806 = vmatprep.subr.mxu0 %v1731_v28  ;;  %v1713_v46 = vld [vmem:[%s4874_s7 + $0x18] sm:$0xff]  ;;  %v1728_v55 = vld [vmem:[%s4874_s7 + $0x90] sm:$0xff]  ;;  %v1592_v43 = vld [vmem:[#allocation10] sm:$0xf] }
 0x21b   : > { %v4215_v45 = vpop.permute.xlu0 %1275  ;;  %2840 = vmatpush3.msra.mxu1 %v1748_v33  ;;  %2807 = vmatpush3.msra.mxu0 %v1715_v35  ;;  %v1745_v15 = vld [vmem:[%s4874_s7 + $0x118] sm:$0xff]  ;;  %v1712_v28 = vld [vmem:[%s4874_s7 + $0x10] sm:$0xff]  ;;  %v1253_v33 = vmul.f32 %v4033_v48, %v3833_v53  ;;  %v1727_v53 = vld [vmem:[%s4874_s7 + $0x88] sm:$0xff] }
 0x21c   : > { %v1170_v54 = vpop.permute.xlu1 %1169  ;;  %2841 = vmatprep.subr.mxu1 %v1763_v50  ;;  %2808 = vmatprep.subr.mxu0 %v1730_v51  ;;  %v1760_v51 = vld [vmem:[%s4874_s7 + $0x190] sm:$0xff] }
 0x21d   : > { %v1182_v1 = vsel %vm987_vm2, %v1170_v54, %v1174_v20  ;;  %v1184_v4 = vsel %vm987_vm2, %v1166_v30, %v1170_v54  ;;  %2842 = vmatpush3.msra.mxu1 %v1747_v61  ;;  %2809 = vmatpush3.msra.mxu0 %v1714_v63  ;;  %v1256_v54 = vmul.f32 %v4048_v59, %v3845_v57  ;;  %v1711_v57 = vld [vmem:[%s4874_s7 + $0x8] sm:$0xff] }
 0x21e   : > { %v1215_v9 = vmul.f32 %v4018_v34, %v1184_v4  ;;  %v1216_v52 = vmul.f32 %v4021_v40, %v1182_v1  ;;  %v1761_v34 = vld [vmem:[%s4874_s7 + $0x198] sm:$0xff]  ;;  %2843 = vmatprep.subr.mxu1 %v1762_v0  ;;  %2810 = vmatprep.subr.mxu0 %v1729_v47  ;;  %v1759_v1 = vld [vmem:[%s4874_s7 + $0x188] sm:$0xff]  ;;  %v1726_v4 = vld [vmem:[%s4874_s7 + $0x80] sm:$0xff] }
 0x21f   : > { %v1268_v19 = vpop.permute.xlu0 %1267  ;;  %2844 = vmatpush3.msra.mxu1 %v1746_v17  ;;  %2811 = vmatpush3.msra.mxu0 %v1713_v46  ;;  %v1710_v17 = vld [vmem:[%s4874_s7] sm:$0xff] }
 0x220   : > { %v1262_v40 = vadd.f32 %v1254_v32, %v1215_v9  ;;  %v1263_v44 = vadd.f32 %v1255_v31, %v1216_v52  ;;  %v1178_v21 = vpop.permute.xlu1 %1177  ;;  %2845 = vmatprep.subr.mxu1 %v1761_v34  ;;  %2812 = vmatprep.subr.mxu0 %v1728_v55  ;;  %v1743_v32 = vld [vmem:[%s4874_s7 + $0x108] sm:$0xff] }
 0x221   : > { %v1180_v35 = vsel %vm987_vm2, %v1174_v20, %v1178_v21  ;;  %v1186_v50 = vsel %vm987_vm2, %v1178_v21, %v1166_v30  ;;  %2846 = vmatpush3.msra.mxu1 %v1745_v15  ;;  %2813 = vmatpush3.msra.mxu0 %v1712_v28  ;;  %v1744_v20 = vld [vmem:[%s4874_s7 + $0x110] sm:$0xff] }
 0x222   : > { %v1214_v61 = vmul.f32 %v4042_v56, %v1186_v50  ;;  %v1217_v63 = vmul.f32 %v4045_v58, %v1180_v35  ;;  %2847 = vmatprep.subr.mxu1 %v1760_v51  ;;  %2814 = vmatprep.subr.mxu0 %v1727_v53 }
 0x223   : > { %v1272_v48 = vpop.permute.xlu0 %1271  ;;  %2848 = vmatpush3.msra.mxu1 %v1744_v20  ;;  %2815 = vmatpush3.msra.mxu0 %v1711_v57 }
 0x224   : > { %v1261_v56 = vadd.f32 %v1253_v33, %v1214_v61  ;;  %v1264_v59 = vadd.f32 %v1256_v54, %v1217_v63  ;;  %v1284_v58 = vsel %vm1089_vm3, %v1272_v48, %v4215_v45  ;;  %v1286_v30 = vsel %vm1089_vm3, %v1268_v19, %v1272_v48  ;;  %v1280_v31 = vpop.permute.xlu1 %1279  ;;  %2849 = vmatprep.subr.mxu1 %v1759_v1  ;;  %v1035_v54 = vld [vmem:[#allocation7 + $0x1] ss:$8 sm:$0xf]  ;;  %v1435_v61 = vld [vmem:[#allocation7 + $0x7] ss:$8 sm:$0xf] }
 0x225   : > { %v1316_v0 = vmul.f32 %v4124_v5, %v1286_v30  ;;  %v1317_v47 = vmul.f32 %v4127_v8, %v1284_v58  ;;  %v1282_v9 = vsel %vm1089_vm3, %v4215_v45, %v1280_v31  ;;  %v1288_v52 = vsel %vm1089_vm3, %v1280_v31, %v1268_v19  ;;  %v1758_v45 = vld [vmem:[%s4874_s7 + $0x180] sm:$0xff]  ;;  %2816 = vmatprep.subr.mxu0 %v1726_v4 }
 0x226   : > { %v1318_v5 = vmul.f32 %v4103_v49, %v1282_v9  ;;  %v1319_v8 = vmul.f32 %v4115_v29, %v1288_v52  ;;  %v1742_v49 = vld [vmem:[%s4874_s7 + $0x100] sm:$0xff]  ;;  %2850 = vmatpush3.msra.mxu1 %v1743_v32  ;;  %2817 = vmatpush3.msra.mxu0 %v1710_v17  ;;  %v1040_v53 = vrot.slane %v1035_v54, %v3785_v38 }
 0x227   : > { %v4314_v46 = vadd.f32 %v1316_v0, %v1261_v56  ;;  %v4316_v19 = vadd.f32 %v1317_v47, %v1262_v40  ;;  %v4318_v34 = vpop.permute.xlu0 %969  ;;  %2851 = vmatprep.subr.mxu1 %v1758_v45  ;;  %v1440_v48 = vrot.slane %v1435_v61, %v3785_v38  ;;  %v1048_v57 = vrot.slane %v1035_v54, %v3788_v39  ;;  %v996_v58 = vld [vmem:[#allocation7] ss:$8 sm:$0xf] }
 0x228   : > { %v4323_v55 = vadd.f32 %v1318_v5, %v1263_v44  ;;  %v4325_v29 = vadd.f32 %v1319_v8, %v1264_v59  ;;  %v4327_v21 = vpop.permute.xlu1 %971  ;;  %2852 = vmatpush3.msra.mxu1 %v1742_v49  ;;  %v1448_v56 = vrot.slane %v1435_v61, %v3788_v39  ;;  %v1044_v59 = vrot.slane %v1035_v54, %v3791_v41 }
 0x229   : > { %v1052_v30 = vrot.slane %v1035_v54, %v3794_v42  ;;  %v1444_v31 = vrot.slane %v1435_v61, %v3791_v41  ;;  %v4357_v4 = vmul.f32 %v1040_v53, %v3860_v60  ;;  %v4360_v0 = vmul.f32 %v1040_v53, %v3867_v62 }
 0x22a   : > { %4936 = vst [vmem:[#allocation25_spill] sm:$0xff] %v4323_v55  ;;  %4937 = vst [vmem:[#allocation26_spill] sm:$0xff] %v4325_v29  ;;  %v4363_v47 = vmul.f32 %v1440_v48, %v3877_v2  ;;  %v1452_v9 = vrot.slane %v1435_v61, %v3794_v42  ;;  %v4369_v32 = vmul.f32 %v1048_v57, %v3883_v3  ;;  %v1396_v61 = vld [vmem:[#allocation7 + $0x6] ss:$8 sm:$0xf] }
 0x22b   : > { %v4329_v40 = vpop.permute.xlu0 %1373  ;;  %v4372_v17 = vmul.f32 %v1448_v56, %v3899_v6  ;;  %v4375_v5 = vmul.f32 %v1440_v48, %v3921_v11  ;;  %v4378_v60 = vrot.slane %v996_v58, %v3791_v41  ;;  %v4381_v62 = vmul.f32 %v1048_v57, %v3905_v7  ;;  %v1099_v6 = vld [vmem:[#allocation7 + $0x2] ss:$8 sm:$0xf] }
 0x22c   : > { %v4331_v15 = vpop.permute.xlu1 %977  ;;  %v1058_v2 = vmul.f32 %v1044_v59, %v3917_v10  ;;  %v4385_v8 = vmul.f32 %v1448_v56, %v3933_v13  ;;  %v4391_v45 = vmul.f32 %v1044_v59, %v3929_v12  ;;  %v4394_v11 = vmul.f32 %v1052_v30, %v3952_v18  ;;  %v1498_v59 = vld [vmem:[#allocation7 + $0x20] ss:$8 sm:$0xf] }
 0x22d   : > { %4939 = vst [vmem:[#allocation28_spill] sm:$0xff] %v4372_v17  ;;  %4940 = vst [vmem:[#allocation29_spill] sm:$0xff] %v4375_v5  ;;  %v4398_v7 = vmul.f32 %v1052_v30, %v3947_v16  ;;  %v4401_v10 = vmul.f32 %v1444_v31, %v3967_v23  ;;  %v4404_v13 = vmul.f32 %v1452_v9, %v3963_v22  ;;  %v951_v12 = vadd.s32 8, %v3782_v37  ;;  %v1562_v37 = vld [vmem:[#allocation8] sm:$0xf] }
 0x22e   : > { %v4410_v18 = vmul.f32 %v1452_v9, %v3975_v24  ;;  %v4413_v53 = vmul.f32 %v1444_v31, %v3987_v25  ;;  %v4417_v48 = vrot.slane %v1099_v6, %v3791_v41  ;;  %v1009_v23 = vrot.slane %v996_v58, %v3788_v39 }
 0x22f   : > { %v4333_v28 = vpop.permute.xlu0 %1075  ;;  %v4421_v22 = vrot.slane %v1099_v6, %v3785_v38  ;;  %v4889_v57 = vmov 0.0   ;;  %v1001_v24 = vrot.slane %v996_v58, %v3785_v38  ;;  %v1013_v25 = vrot.slane %v996_v58, %v3794_v42 }
 0x230   : > { %v4335_v33 = vpop.permute.xlu1 %1081  ;;  %4941 = vst [vmem:[#allocation30_spill] sm:$0xff] %v4410_v18  ;;  %4942 = vst [vmem:[#allocation31_spill] sm:$0xff] %v4413_v53  ;;  %v4424_v56 = vsel %vm1137_vm4, 1.0, %v4889_v57  ;;  %v4429_v31 = vrot.slane %v1396_v61, %v3791_v41  ;;  %v4432_v9 = vrot.slane %v1396_v61, %v3788_v39  ;;  %v4443_v14 = vrot.slane %v1396_v61, %v3794_v42 }
 0x231   : > { %v4446_v58 = vrot.slane %v1099_v6, %v3788_v39  ;;  %vm1539_vm5 = vcmp.lt.s32.totalorder %v951_v12, 15  ;;  %v4450_v18 = vrot.slane %v1099_v6, %v3794_v42  ;;  %v4453_v53 = vrot.slane %v1498_v59, %v3791_v41 }
 0x232   : > { %v4459_v55 = vrot.slane %v1592_v43, %v3791_v41  ;;  %v4465_v12 = vrot.slane %v1498_v59, %v3794_v42 }
 0x233   : > { %v4337_v35 = vpop.permute.xlu0 %1475  ;;  %4944 = vst [vmem:[#allocation33_spill] sm:$0xff] %v4453_v53 }
 0x234   : > { %4938 = vst [vmem:[#allocation27_spill] sm:$0xff] %v4337_v35  ;;  %v4339_v44 = vpop.permute.xlu1 %1073  ;;  %4946 = vst [vmem:[#allocation35_spill] sm:$0xff] %v4459_v55 }
 0x235   : > { %4948 = vst [vmem:[#allocation37_spill] sm:$0xff] %v4465_v12 }
 0x237   : > { %v4341_v50 = vpop.permute.xlu0 %1379 }
 0x238   : > { %v4343_v51 = vpop.permute.xlu1 %979 }
 0x23b   : > { %v4345_v63 = vpop.permute.xlu0 %1481 }
 0x23c   : > { %v4349_v20 = vpop.permute.xlu1 %1083 }
 0x23f   : > { %v974_v1 = vpop.permute.xlu0 %973 }
 0x240   : > { %v4366_v52 = vpop.permute.xlu1 %1371  ;;  %v992_v3 = vsel %vm987_vm2, %v4318_v34, %v974_v1 }
 0x241   : > { %v1019_v16 = vmul.f32 %v4378_v60, %v992_v3  ;;  %v4435_v3 = vrot.slane %v1396_v61, %v3785_v38  ;;  %v4462_v61 = vrot.slane %v1498_v59, %v3788_v39 }
 0x243   : > { %v976_v49 = vpop.permute.xlu0 %975  ;;  %v1066_v35 = vadd.f32 %v1058_v2, %v1019_v16  ;;  %4947 = vst [vmem:[#allocation36_spill] sm:$0xff] %v4462_v61  ;;  %v990_v2 = vsel %vm987_vm2, %v974_v1, %v4331_v15  ;;  %v4483_v61 = vrot.slane %v1562_v37, %v3788_v39 }
 0x244   : > { %v4406_v54 = vpop.permute.xlu1 %1381  ;;  %v993_v55 = vsel %vm987_vm2, %v4327_v21, %v976_v49 }
 0x245   : > { %4952 = vst [vmem:[#allocation40_spill] sm:$0xff] %v4483_v61 }
 0x247   : > { %v1078_v30 = vpop.permute.xlu0 %1077 }
 0x248   : > { %v4437_v17 = vpop.permute.xlu1 %1483  ;;  %v1092_v57 = vsel %vm1089_vm3, %v1078_v30, %v4335_v33 }
 0x249   : > { %4943 = vst [vmem:[#allocation32_spill] sm:$0xff] %v4437_v17  ;;  %v1122_v29 = vmul.f32 %v4417_v48, %v1092_v57  ;;  %v4456_v17 = vrot.slane %v1562_v37, %v3791_v41  ;;  %v4949_v57 = vmov 0.0   ;;  %v991_v41 = vsel %vm987_vm2, %v976_v49, %v4343_v51 }
 0x24a   : > { %v4471_v53 = vsel %vm1539_vm5, 1.0, %v4949_v57  ;;  %v1020_v57 = vmul.f32 %v1009_v23, %v990_v2 }
 0x24b   : > { %4945 = vst [vmem:[#allocation34_spill] sm:$0xff] %v4456_v17  ;;  %v1130_v6 = vadd.f32 %v1122_v29, %v1066_v35  ;;  %v984_v16 = vpop.permute.xlu0 %983  ;;  %4950 = vst [vmem:[#allocation38_spill] sm:$0xff] %v4471_v53  ;;  %v4474_v17 = vrot.slane %v1498_v59, %v3785_v38  ;;  %v4486_v29 = vrot.slane %v1562_v37, %v3794_v42 }
 0x24c   : > { %v982_v12 = vpop.permute.xlu1 %981  ;;  %v1094_v35 = vsel %vm1089_vm3, %v4339_v44, %v1078_v30  ;;  %v995_v49 = vsel %vm987_vm2, %v984_v16, %v4327_v21  ;;  %v4502_v53 = vrot.slane %v1562_v37, %v3785_v38  ;;  %v1023_v30 = vmul.f32 %v4378_v60, %v993_v55 }
 0x24d   : > { %4951 = vst [vmem:[#allocation39_spill] sm:$0xff] %v4474_v17  ;;  %4953 = vst [vmem:[#allocation41_spill] sm:$0xff] %v4486_v29  ;;  %v1148_v1 = vmul.f32 %v4424_v56, %v1130_v6  ;;  %v994_v59 = vsel %vm987_vm2, %v982_v12, %v4318_v34  ;;  %v988_v61 = vsel %vm987_vm2, %v4331_v15, %v982_v12 }
 0x24e   : > { %v1018_v29 = vmul.f32 %v1001_v24, %v994_v59  ;;  %v1024_v6 = vmul.f32 %v1009_v23, %v991_v41  ;;  %v989_v34 = vsel %vm987_vm2, %v4343_v51, %v984_v16  ;;  %v1121_v2 = vmul.f32 %v4421_v22, %v1094_v35 }
 0x24f   : > { %v4506_v17 = vadd.f32 %v4195_v36, %v1148_v1  ;;  %v1386_v21 = vpop.permute.xlu0 %1385  ;;  %v1022_v15 = vmul.f32 %v1001_v24, %v995_v49  ;;  %v1021_v55 = vmul.f32 %v1013_v25, %v988_v61  ;;  %v4520_v36 = vrot.slane %v1592_v43, %v3788_v39 }
 0x250   : > { %v1065_v5 = vadd.f32 %v4357_v4, %v1018_v29  ;;  %v1378_v12 = vpop.permute.xlu1 %1377  ;;  %v1388_v37 = vsel %vm987_vm2, %v4406_v54, %v1386_v21  ;;  %v4523_v51 = vrot.slane %v1592_v43, %v3794_v42  ;;  %v1067_v60 = vadd.f32 %v4369_v32, %v1020_v57 }
 0x251   : > { %v1392_v41 = vsel %vm987_vm2, %v4329_v40, %v1378_v12  ;;  %v1025_v23 = vmul.f32 %v1013_v25, %v989_v34  ;;  %v4527_v24 = vrot.slane %v1592_v43, %v3785_v38  ;;  %v1070_v16 = vadd.f32 %v4391_v45, %v1023_v30 }
 0x252   : > { %v1129_v4 = vadd.f32 %v1121_v2, %v1065_v5  ;;  %v1390_v61 = vsel %vm987_vm2, %v1378_v12, %v4406_v54  ;;  %v1423_v29 = vmul.f32 %v4429_v31, %v1392_v41  ;;  %v1425_v35 = vmul.f32 %v4443_v14, %v1388_v37 }
 0x253   : > { %v1080_v1 = vpop.permute.xlu0 %1079  ;;  %v1071_v59 = vadd.f32 %v4381_v62, %v1024_v6  ;;  %v1069_v5 = vadd.f32 %v4360_v0, %v1022_v15  ;;  %v1394_v43 = vsel %vm987_vm2, %v1386_v21, %v4329_v40  ;;  %v1068_v25 = vadd.f32 %v4394_v11, %v1021_v55 }
 0x254   : > { %v1147_v32 = vmul.f32 %v4424_v56, %v1129_v4  ;;  %v1384_v45 = vpop.permute.xlu1 %1383  ;;  %v1093_v57 = vsel %vm1089_vm3, %v1080_v1, %v4349_v20  ;;  %v1095_v62 = vsel %vm1089_vm3, %v4333_v28, %v1080_v1  ;;  %v1072_v0 = vadd.f32 %v4398_v7, %v1025_v23  ;;  %v4954_v1 = vld [vmem:[#allocation29_spill] sm:$0xff] }
 0x255   : > { %v1393_v54 = vsel %vm987_vm2, %v1384_v45, %v4366_v52  ;;  %v1424_v49 = vmul.f32 %v4432_v9, %v1390_v61  ;;  %v1125_v40 = vmul.f32 %v4421_v22, %v1095_v62  ;;  %v1126_v11 = vmul.f32 %v4417_v48, %v1093_v57  ;;  %v4958_v62 = vld [vmem:[#allocation30_spill] sm:$0xff] }
 0x256   : > { %v1470_v30 = vadd.f32 %v4401_v10, %v1423_v29  ;;  %v1422_v6 = vmul.f32 %v4435_v3, %v1394_v43  ;;  %v1472_v34 = vadd.f32 %v4404_v13, %v1425_v35  ;;  %v4559_v2 = vadd.f32 %v4192_v27, %v1147_v32  ;;  %v4955_v32 = vld [vmem:[#allocation25_spill] sm:$0xff] }
 0x257   : > { %v1086_v21 = vpop.permute.xlu0 %1085  ;;  %v1387_v7 = vsel %vm987_vm2, %v4341_v50, %v1384_v45  ;;  %v1418_v15 = vmul.f32 %v4435_v3, %v1393_v54  ;;  %v1133_v12 = vadd.f32 %v1125_v40, %v1069_v5  ;;  %v1134_v22 = vadd.f32 %v1126_v11, %v1070_v16  ;;  %v4956_v43 = vld [vmem:[#allocation33_spill] sm:$0xff]  ;;  %v4960_v40 = vld [vmem:[#allocation32_spill] sm:$0xff] }
 0x258   : > { %v1088_v37 = vpop.permute.xlu1 %1087  ;;  %v1090_v27 = vsel %vm1089_vm3, %v4335_v33, %v1086_v21  ;;  %v1096_v48 = vsel %vm1089_vm3, %v1086_v21, %v4339_v44  ;;  %v1471_v4 = vadd.f32 %v4385_v8, %v1424_v49 }
 0x259   : > { %v1091_v10 = vsel %vm1089_vm3, %v4349_v20, %v1088_v37  ;;  %v1097_v13 = vsel %vm1089_vm3, %v1088_v37, %v4333_v28  ;;  %v1350_v3 = vadd.f32 %v4314_v46, %v1133_v12  ;;  %v4579_v55 = vadd.f32 %v4316_v19, %v1134_v22  ;;  %v4963_v22 = vld [vmem:[#allocation36_spill] sm:$0xff] }
 0x25a   : > { %v1127_v41 = vmul.f32 %v4446_v58, %v1091_v10  ;;  %v1128_v20 = vmul.f32 %v4450_v18, %v1097_v13  ;;  %v1421_v28 = vmul.f32 %v4443_v14, %v1387_v7  ;;  %v1123_v23 = vmul.f32 %v4446_v58, %v1090_v27  ;;  %v4964_v10 = vld [vmem:[#allocation37_spill] sm:$0xff] }
 0x25b   : > { %v1124_v33 = vmul.f32 %v4450_v18, %v1096_v48  ;;  %v1376_v16 = vpop.permute.xlu0 %1375  ;;  %v1469_v58 = vadd.f32 %v4363_v47, %v1422_v6  ;;  %v4961_v6 = vld [vmem:[#allocation27_spill] sm:$0xff] }
 0x25c   : > { %v1135_v61 = vadd.f32 %v1127_v41, %v1071_v59  ;;  %v1136_v44 = vadd.f32 %v1128_v20, %v1072_v0  ;;  %v1478_v29 = vpop.permute.xlu1 %1477  ;;  %v1389_v46 = vsel %vm987_vm2, %v1376_v16, %v4341_v50  ;;  %v1391_v19 = vsel %vm987_vm2, %v4366_v52, %v1376_v16  ;;  %v4965_v48 = vld [vmem:[#allocation23_spill] sm:$0xff]  ;;  %v4966_v20 = vld [vmem:[#allocation28_spill] sm:$0xff] }
 0x25d   : > { %v1131_v35 = vadd.f32 %v1123_v23, %v1067_v60  ;;  %v1132_v8 = vadd.f32 %v1124_v33, %v1068_v25  ;;  %v1491_v14 = vsel %vm1089_vm3, %v1478_v29, %v4345_v63  ;;  %v1419_v18 = vmul.f32 %v4429_v31, %v1391_v19  ;;  %v4957_v25 = vld [vmem:[#allocation31_spill] sm:$0xff]  ;;  %v4959_v31 = vld [vmem:[#allocation26_spill] sm:$0xff]  ;;  %v4967_v16 = vld [vmem:[#allocation24_spill] sm:$0xff] }
 0x25e   : > { %v1465_v59 = vadd.f32 %v4954_v1, %v1418_v15  ;;  %v1352_v5 = vadd.f32 %v4955_v32, %v1135_v61  ;;  %v1521_v50 = vmul.f32 %v4956_v43, %v1491_v14  ;;  %v1420_v60 = vmul.f32 %v4432_v9, %v1389_v46  ;;  %v4962_v15 = vld [vmem:[#allocation39_spill] sm:$0xff]  ;;  %v4969_v32 = vld [vmem:[#allocation38_spill] sm:$0xff] }
 0x25f   : > { %v1149_v45 = vmul.f32 %v4424_v56, %v1131_v35  ;;  %v1150_v52 = vmul.f32 %v4424_v56, %v1132_v8  ;;  %v1466_v54 = vadd.f32 %v4957_v25, %v1419_v18  ;;  %v1480_v57 = vpop.permute.xlu0 %1479  ;;  %v1468_v0 = vadd.f32 %v4958_v62, %v1421_v28  ;;  %v4968_v18 = vld [vmem:[#allocation34_spill] sm:$0xff] }
 0x260   : > { %v1353_v49 = vadd.f32 %v4959_v31, %v1136_v44  ;;  %v1488_v47 = vpop.permute.xlu1 %1487  ;;  %v1492_v11 = vsel %vm1089_vm3, %v1480_v57, %v4960_v40  ;;  %v1494_v21 = vsel %vm1089_vm3, %v4961_v6, %v1480_v57  ;;  %v1467_v28 = vadd.f32 %v4966_v20, %v1420_v60 }
 0x261   : > { %v1529_v7 = vadd.f32 %v1521_v50, %v1466_v54  ;;  %v1490_v56 = vsel %vm1089_vm3, %v4960_v40, %v1488_v47  ;;  %v1496_v9 = vsel %vm1089_vm3, %v1488_v47, %v4961_v6  ;;  %v1524_v12 = vmul.f32 %v4962_v15, %v1494_v21  ;;  %v4972_v21 = vld [vmem:[#allocation41_spill] sm:$0xff] }
 0x262   : > { %v1526_v37 = vmul.f32 %v4963_v22, %v1490_v56  ;;  %v1527_v13 = vmul.f32 %v4964_v10, %v1496_v9  ;;  %v1525_v27 = vmul.f32 %v4956_v43, %v1492_v11  ;;  %v1348_v41 = vadd.f32 %v4965_v48, %v1149_v45  ;;  %v4971_v11 = vld [vmem:[#allocation40_spill] sm:$0xff] }
 0x263   : > { %v1555_v23 = vadd.f32 %v1529_v7, %v4506_v17  ;;  %v1532_v33 = vadd.f32 %v1524_v12, %v1469_v58  ;;  %v1349_v61 = vadd.f32 %v4967_v16, %v1150_v52  ;;  %v1474_v44 = vpop.permute.xlu0 %1473 }
 0x264   : > { %v1534_v46 = vadd.f32 %v1526_v37, %v1471_v4  ;;  %v1535_v19 = vadd.f32 %v1527_v13, %v1472_v34  ;;  %v1533_v35 = vadd.f32 %v1525_v27, %v1470_v30  ;;  %v1486_v8 = vpop.permute.xlu1 %1485  ;;  %v1493_v14 = vsel %vm1089_vm3, %v1474_v44, %v1478_v29  ;;  %v4970_v29 = vld [vmem:[#allocation35_spill] sm:$0xff] }
 0x265   : > { %v1585_v1 = vmul.f32 %v4968_v18, %v1555_v23  ;;  %v1550_v43 = vmul.f32 %v4969_v32, %v1532_v33  ;;  %v1489_v50 = vsel %vm1089_vm3, %v4345_v63, %v1486_v8  ;;  %v1495_v17 = vsel %vm1089_vm3, %v1486_v8, %v1474_v44 }
 0x266   : > { %v1552_v58 = vmul.f32 %v4969_v32, %v1534_v46  ;;  %v1553_v34 = vmul.f32 %v4969_v32, %v1535_v19  ;;  %v1551_v30 = vmul.f32 %v4969_v32, %v1533_v35  ;;  %v1522_v4 = vmul.f32 %v4963_v22, %v1489_v50 }
 0x267   : > { %v4641_v45 = vadd.f32 %v4970_v29, %v1585_v1  ;;  %v1558_v52 = vadd.f32 %v1550_v43, %v1350_v3  ;;  %v1520_v60 = vmul.f32 %v4962_v15, %v1493_v14  ;;  %v1523_v25 = vmul.f32 %v4964_v10, %v1495_v17 }
 0x268   : > { %v1560_v63 = vadd.f32 %v1552_v58, %v1352_v5  ;;  %v1561_v54 = vadd.f32 %v1553_v34, %v1353_v49  ;;  %v1559_v26 = vadd.f32 %v1551_v30, %v4579_v55  ;;  %v1530_v57 = vadd.f32 %v1522_v4, %v1467_v28 }
 0x269   : > { %v2727_v62 = vmul.f32 -1.442695, %v4641_v45  ;;  %v1588_v31 = vmul.f32 %v4502_v53, %v1558_v52  ;;  %v1528_v47 = vadd.f32 %v1520_v60, %v1465_v59  ;;  %v1531_v40 = vadd.f32 %v1523_v25, %v1468_v0 }
 0x26a   : > { %v1590_v6 = vmul.f32 %v4971_v11, %v1560_v63  ;;  %v1591_v7 = vmul.f32 %v4972_v21, %v1561_v54  ;;  %v1589_v3 = vmul.f32 %v4968_v18, %v1559_v26  ;;  %v1556_v56 = vadd.f32 %v1530_v57, %v1348_v41 }
 0x26b   : > { %3121 = vpow2.f32 %v2727_v62  ;;  %v1618_v5 = vadd.f32 %v4527_v24, %v1588_v31  ;;  %v1554_v49 = vadd.f32 %v1528_v47, %v4559_v2  ;;  %v1557_v55 = vadd.f32 %v1531_v40, %v1349_v61 }
 0x26c   : > { %v1620_v9 = vadd.f32 %v4520_v36, %v1590_v6  ;;  %v1621_v15 = vadd.f32 %v4523_v51, %v1591_v7  ;;  %v1619_v59 = vadd.f32 %v4970_v29, %v1589_v3  ;;  %v1586_v0 = vmul.f32 %v4971_v11, %v1556_v56 }
 0x26d   : > { %v2730_v12 = vmul.f32 -1.442695, %v1618_v5  ;;  %v1584_v22 = vmul.f32 %v4502_v53, %v1554_v49  ;;  %v1587_v37 = vmul.f32 %v4972_v21, %v1557_v55 }
 0x26e   : > { %v2732_v10 = vmul.f32 -1.442695, %v1620_v9  ;;  %v2733_v13 = vmul.f32 -1.442695, %v1621_v15  ;;  %v2731_v27 = vmul.f32 -1.442695, %v1619_v59  ;;  %v1616_v48 = vadd.f32 %v4520_v36, %v1586_v0 }
 0x26f   : > { %3123 = vpow2.f32 %v2730_v12  ;;  %v1614_v2 = vadd.f32 %v4527_v24, %v1584_v22  ;;  %v1617_v41 = vadd.f32 %v4523_v51, %v1587_v37 }
 0x270   : > { %3125 = vpow2.f32 %v2732_v10  ;;  %v2728_v20 = vmul.f32 -1.442695, %v1616_v48 }
 0x271   : > { %3127 = vpow2.f32 %v2733_v13  ;;  %v2726_v28 = vmul.f32 -1.442695, %v1614_v2  ;;  %v2729_v23 = vmul.f32 -1.442695, %v1617_v41 }
 0x272   : > { %3129 = vpow2.f32 %v2731_v27 }
 0x273   : > { %3131 = vpow2.f32 %v2728_v20 }
 0x274   : > { %3133 = vpow2.f32 %v2726_v28 }
 0x275   : > { %3135 = vpow2.f32 %v2729_v23 }
 0x278   : > { %v3122_v53 = vpop.eup %3121 }
 0x279   : > { %v1647_v33 = vadd.f32 1.0, %v3122_v53 }
 0x27b   : > { %3137 = vrcp.f32 %v1647_v33 }
 0x27c   : > { %v3124_v16 = vpop.eup %3123 }
 0x27d   : > { %v3126_v61 = vpop.eup %3125  ;;  %v1650_v44 = vadd.f32 1.0, %v3124_v16 }
 0x27e   : > { %v3128_v36 = vpop.eup %3127  ;;  %v1652_v46 = vadd.f32 1.0, %v3126_v61  ;;  %v4973_v61 = vmov 0.0  }
 0x27f   : > { %v3130_v24 = vpop.eup %3129  ;;  %v1653_v19 = vadd.f32 1.0, %v3128_v36  ;;  %3139 = vrcp.f32 %v1650_v44  ;;  %v3425_v44 = vmov 1983009808  }
 0x280   : > { %v3132_v51 = vpop.eup %3131  ;;  %3141 = vrcp.f32 %v1652_v46  ;;  %v1651_v35 = vadd.f32 1.0, %v3130_v24  ;;  %v1927_v36 = vunpack.c.l.s4 %v3425_v44  ;;  %v1922_v24 = vld [vmem:[%s4876_s9] sm:$0xff] }
 0x281   : > { %v3134_v8 = vpop.eup %3133  ;;  %3143 = vrcp.f32 %v1653_v19  ;;  %v1648_v14 = vadd.f32 1.0, %v3132_v51  ;;  %v4974_v19 = vld [vmem:[#allocation21_spill] sm:$0xff]  ;;  %v3085_v44 = vld [vmem:[%s4878_s11 + $0x40] sm:$0xff]  }
 0x282   : > { %v3136_v18 = vpop.eup %3135  ;;  %3145 = vrcp.f32 %v1651_v35  ;;  %v1646_v1 = vadd.f32 1.0, %v3134_v8  ;;  %v1928_v46 = vunpack.c.0.s8 %v1927_v36  ;;  %v1925_v35 = vcombine.high %v1922_v24, %v1922_v24  ;;  %v3086_v36 = vld [vmem:[%s4878_s11 + $0xc0] sm:$0xff]  }
 0x283   : > { %3147 = vrcp.f32 %v1648_v14  ;;  %v1649_v32 = vadd.f32 1.0, %v3136_v18 }
 0x284   : > { %3149 = vrcp.f32 %v1646_v1  ;;  %v1931_v51 = vsub.s32 %v1928_v46, %v4974_v19  ;;  %v3087_v46 = vld [vmem:[%s4878_s11] sm:$0xff]  }
 0x285   : > { %3151 = vrcp.f32 %v1649_v32  ;;  %v1923_v19 = vld [vmem:[%s4877_s10] sm:$0xf] }
 0x286   : > { %v1932_v8 = vrot.slane %v1922_v24, %v1931_v51  ;;  %v1939_v14 = vrot.slane %v1925_v35, %v1931_v51  ;;  %v3088_v24 = vld [vmem:[%s4878_s11 + $0x80] sm:$0xff]   ;;  %v1946_v51 = vrot.slane %v1923_v19, %v3785_v38  ;;  %v1954_v35 = vrot.slane %v1923_v19, %v3788_v39 }
 0x288   : > { %v3138_v43 = vpop.eup %3137  ;;  %v1940_v18 = vcombine.high %v1932_v8, %v1932_v8  ;;  %v1941_v1 = vcombine.high %v1939_v14, %v1939_v14 }
 0x289   : > { %v4663_v4 = vmul.f32 %v3138_v43, %v4641_v45 }
 0x28a   : > { %2735 = vmatprep.subr.msk.mxu0 %vm1967_vm6, %v1940_v18  ;;  %2738 = vmatprep.subr.msk.mxu1 %vm1967_vm6, %v1941_v1  ;;  %v1958_v18 = vrot.slane %v1923_v19, %v3794_v42 }
 0x28c   : > { %v3140_v50 = vpop.eup %3139 }
 0x28d   : > { %v3142_v17 = vpop.eup %3141  ;;  %v4671_v54 = vmul.f32 %v3140_v50, %v1618_v5  ;;  %v1774_v50 = vld [vmem:[#allocation11] sm:$0x1] }
 0x28e   : > { %v3144_v58 = vpop.eup %3143  ;;  %v4667_v60 = vmul.f32 %v3142_v17, %v1620_v9 }
 0x28f   : > { %v3146_v34 = vpop.eup %3145  ;;  %v4679_v31 = vmul.f32 %v3144_v58, %v1621_v15 }
 0x290   : > { %v3148_v30 = vpop.eup %3147  ;;  %v4665_v29 = vmul.f32 %v3146_v34, %v1619_v59 }
 0x291   : > { %v3150_v52 = vpop.eup %3149  ;;  %v4669_v25 = vmul.f32 %v3148_v30, %v1616_v48 }
 0x292   : > { %v3152_v63 = vpop.eup %3151  ;;  %v4673_v26 = vmul.f32 %v3150_v52, %v1614_v2  ;;  %v1685_v57 = vadd.f32 %v4665_v29, %v4663_v4 }
 0x293   : > { %v4677_v62 = vmul.f32 %v3152_v63, %v1617_v41  ;;  %v1692_v45 = vadd.f32 %v4667_v60, %v4669_v25 }
 0x294   : > { %v1686_v47 = vrot.slane %v1685_v57, 4  ;;  %v1678_v40 = vadd.f32 %v4671_v54, %v4673_v26 }
 0x295   : > { %v1699_v11 = vadd.f32 %v4679_v31, %v4677_v62  ;;  %v1693_v6 = vrot.slane %v1692_v45, 4 }
 0x296   : > { %v1687_v21 = vadd.f32 %v1686_v47, %v1685_v57  ;;  %v1679_v7 = vrot.slane %v1678_v40, 4 }
 0x297   : > { %v1700_v3 = vrot.slane %v1699_v11, 4  ;;  %v1694_v56 = vadd.f32 %v1693_v6, %v1692_v45  ;;  %v3057_v6 = vld [vmem:[%s4878_s11 + $0x78] sm:$0xff]  }
 0x298   : > { %v1688_v5 = vrot.slane %v1687_v21, 2  ;;  %v1680_v49 = vadd.f32 %v1679_v7, %v1678_v40  ;;  %v3059_v7 = vld [vmem:[%s4878_s11 + $0x38] sm:$0xff]  }
 0x299   : > { %v1701_v55 = vadd.f32 %v1700_v3, %v1699_v11  ;;  %v1695_v9 = vrot.slane %v1694_v56, 2  ;;  %v3060_v3 = vld [vmem:[%s4878_s11 + $0xb8] sm:$0xff]  }
 0x29a   : > { %v1689_v15 = vadd.f32 %v1688_v5, %v1687_v21  ;;  %v1681_v59 = vrot.slane %v1680_v49, 2  ;;  %v3058_v21 = vld [vmem:[%s4878_s11 + $0xf8] sm:$0xff]   ;;  %v3062_v5 = vld [vmem:[%s4878_s11 + $0xf0] sm:$0xff]  }
 0x29b   : > { %v1702_v0 = vrot.slane %v1701_v55, 2  ;;  %v1696_v12 = vadd.f32 %v1695_v9, %v1694_v56  ;;  %v3061_v56 = vld [vmem:[%s4878_s11 + $0x70] sm:$0xff]   ;;  %v3065_v9 = vld [vmem:[%s4878_s11 + $0x68] sm:$0xff]  }
 0x29c   : > { %v1690_v22 = vrot.slane %v1689_v15, 1  ;;  %v1682_v37 = vadd.f32 %v1681_v59, %v1680_v49  ;;  %v3063_v49 = vld [vmem:[%s4878_s11 + $0x30] sm:$0xff]   ;;  %v3067_v59 = vld [vmem:[%s4878_s11 + $0x28] sm:$0xff]  }
 0x29d   : > { %v1703_v10 = vadd.f32 %v1702_v0, %v1701_v55  ;;  %v1697_v13 = vrot.slane %v1696_v12, 1  ;;  %v3064_v55 = vld [vmem:[%s4878_s11 + $0xb0] sm:$0xff]   ;;  %v3068_v0 = vld [vmem:[%s4878_s11 + $0xa8] sm:$0xff]  }
 0x29e   : > { %v1691_v27 = vadd.f32 %v1690_v22, %v1689_v15  ;;  %v1683_v48 = vrot.slane %v1682_v37, 1  ;;  %v3066_v15 = vld [vmem:[%s4878_s11 + $0xe8] sm:$0xff]   ;;  %v3070_v22 = vld [vmem:[%s4878_s11 + $0xe0] sm:$0xff]  }
 0x29f   : > { %v1704_v2 = vrot.slane %v1703_v10, 1  ;;  %v1698_v41 = vadd.f32 %v1697_v13, %v1696_v12  ;;  %v3069_v12 = vld [vmem:[%s4878_s11 + $0x60] sm:$0xff]   ;;  %v3073_v13 = vld [vmem:[%s4878_s11 + $0x58] sm:$0xff]  }
 0x2a0   : > { %v1707_v20 = vmul.f32 0.00390625, %v1691_v27  ;;  %v1684_v28 = vadd.f32 %v1683_v48, %v1682_v37  ;;  %v3071_v37 = vld [vmem:[%s4878_s11 + $0x20] sm:$0xff]   ;;  %v3074_v27 = vld [vmem:[%s4878_s11 + $0xd8] sm:$0xff]  }
 0x2a1   : > { %v1705_v23 = vadd.f32 %v1704_v2, %v1703_v10  ;;  %v1708_v33 = vmul.f32 0.00390625, %v1698_v41  ;;  %v3072_v10 = vld [vmem:[%s4878_s11 + $0xa0] sm:$0xff]   ;;  %v3075_v48 = vld [vmem:[%s4878_s11 + $0x18] sm:$0xff]   ;;  %v3077_v41 = vld [vmem:[%s4878_s11 + $0x50] sm:$0xff]  }
 0x2a2   : > { %1839 = vmatprep.mubr.f32.mxu0 %v1707_v20  ;;  %v1706_v53 = vmul.f32 0.00390625, %v1684_v28  ;;  %v3076_v2 = vld [vmem:[%s4878_s11 + $0x98] sm:$0xff]   ;;  %v3078_v20 = vld [vmem:[%s4878_s11 + $0xd0] sm:$0xff]  }
 0x2a3   : > { %v1709_v16 = vmul.f32 0.00390625, %v1705_v23  ;;  %v3079_v28 = vld [vmem:[%s4878_s11 + $0x10] sm:$0xff]  }
 0x2a4   : > { %1840 = vmatmul.mubr.f32.vlgmr.msra.gmra.mxu0 %v1706_v53  ;;  %v3080_v23 = vld [vmem:[%s4878_s11 + $0x90] sm:$0xff]   ;;  %v3081_v53 = vld [vmem:[%s4878_s11 + $0x48] sm:$0xff]  }
 0x2a5   : > { %1909 = vmatprep.mubr.f32.mxu1 %v1709_v16  ;;  %2040 = vmatprep.mubr.f32.mxu0 %v4973_v61  ;;  %v3083_v16 = vld [vmem:[%s4878_s11 + $0x8] sm:$0xff]  }
 0x2a6   : > { %1910 = vmatmul.mubr.f32.vlgmr.msra.gmra.mxu1 %v1708_v33  ;;  %2736 = vmatpush1.msk.msra.mxu0 %vm1967_vm6, %v1932_v8  ;;  %v3082_v33 = vld [vmem:[%s4878_s11 + $0xc8] sm:$0xff]   ;;  %v4975_v8 = vld [vmem:[#allocation22_spill] sm:$0xff] }
 0x2a7   : > { %2111 = vmatprep.mubr.f32.mxu1 %v4973_v61  ;;  %2739 = vmatpush1.msk.msra.mxu1 %vm1967_vm6, %v1939_v14  ;;  %v3084_v61 = vld [vmem:[%s4878_s11 + $0x88] sm:$0xff]   ;;  %v1950_v14 = vrot.slane %v1923_v19, %v4975_v8  ;;  %v3173_v19 = vld [vmem:[%s3665_s28] sm:$0xff] }
 0x2a8   : > { %2856 = vmatprep.subr.bf16.mxu0 %v3057_v6  ;;  %2878 = vmatprep.subr.bf16.mxu1 %v3058_v21 }
 0x364   : > { %v2818_v32 = vpop.f32.mrf.mxu0 }
 0x366   : > { %v2853_v43 = vpop.f32.mrf.mxu1  ;;  %v2819_v17 = vpop.f32.mrf.mxu0 }
 0x367   : > { %v2820_v58 = vadd.f32 %v2819_v17, %v2818_v32 }
 0x368   : > { %v2854_v34 = vpop.f32.mrf.mxu1 }
 0x369   : > { %v1842_v30 = vadd.f32 %v2820_v58, %v1774_v50  ;;  %v2855_v52 = vadd.f32 %v2854_v34, %v2853_v43 }
 0x36b   : > { %v1912_v63 = vadd.f32 %v2855_v52, %v1842_v30 }
 0x36d   : > { %v2734_v57 = vmul.f32 -1.442695, %v1912_v63 }
 0x36f   : > { %3153 = vpow2.f32 %v2734_v57 }
 0x37c   : > { %v3154_v45 = vpop.eup %3153 }
 0x37d   : > { %v1918_v47 = vadd.f32 1.0, %v3154_v45 }
 0x37f   : > { %3155 = vrcp.f32 %v1918_v47 }
 0x38c   : > { %v3156_v40 = vpop.eup %3155 }
 0x38d   : > { %v1921_v11 = vmul.f32 %v3156_v40, %v1912_v63 }
 0x38f   : > { %2737 = vmatmul.mubr.msk.f32.vlgmr.msra.gmra.mxu0 %vm1963_vm7, %v1921_v11  ;;  %2740 = vmatmul.mubr.msk.f32.vlgmr.msra.gmra.mxu1 %vm1963_vm7, %v1921_v11 }
 0x390   : > { %2857 = vmatpush3.bf16.msra.mxu0 %v3059_v7  ;;  %2879 = vmatpush3.bf16.msra.mxu1 %v3060_v3 }
 0x391   : > { %2858 = vmatprep.subr.bf16.mxu0 %v3061_v56  ;;  %2880 = vmatprep.subr.bf16.mxu1 %v3062_v5 }
 0x394   : > { %2859 = vmatpush3.bf16.msra.mxu0 %v3063_v49  ;;  %2881 = vmatpush3.bf16.msra.mxu1 %v3064_v55 }
 0x395   : > { %2860 = vmatprep.subr.bf16.mxu0 %v3065_v9  ;;  %2882 = vmatprep.subr.bf16.mxu1 %v3066_v15 }
 0x398   : > { %2861 = vmatpush3.bf16.msra.mxu0 %v3067_v59  ;;  %2883 = vmatpush3.bf16.msra.mxu1 %v3068_v0 }
 0x399   : > { %2862 = vmatprep.subr.bf16.mxu0 %v3069_v12  ;;  %2884 = vmatprep.subr.bf16.mxu1 %v3070_v22 }
 0x39c   : > { %2863 = vmatpush3.bf16.msra.mxu0 %v3071_v37  ;;  %2885 = vmatpush3.bf16.msra.mxu1 %v3072_v10 }
 0x39d   : > { %2864 = vmatprep.subr.bf16.mxu0 %v3073_v13  ;;  %2886 = vmatprep.subr.bf16.mxu1 %v3074_v27 }
 0x3a0   : > { %2865 = vmatpush3.bf16.msra.mxu0 %v3075_v48  ;;  %2887 = vmatpush3.bf16.msra.mxu1 %v3076_v2 }
 0x3a1   : > { %2866 = vmatprep.subr.bf16.mxu0 %v3077_v41  ;;  %2888 = vmatprep.subr.bf16.mxu1 %v3078_v20 }
 0x3a4   : > { %2867 = vmatpush3.bf16.msra.mxu0 %v3079_v28  ;;  %2889 = vmatpush3.bf16.msra.mxu1 %v3080_v23 }
 0x3a5   : > { %2868 = vmatprep.subr.bf16.mxu0 %v3081_v53  ;;  %2890 = vmatprep.subr.bf16.mxu1 %v3082_v33  ;;  %v2778_v33 = vld [vmem:[%s4880_s13] ss:$0 sm:$0xff] }
 0x3a8   : > { %2869 = vmatpush3.bf16.msra.mxu0 %v3083_v16  ;;  %2891 = vmatpush3.bf16.msra.mxu1 %v3084_v61 }
 0x3a9   : > { %2870 = vmatprep.subr.bf16.mxu0 %v3085_v44  ;;  %2892 = vmatprep.subr.bf16.mxu1 %v3086_v36 }
 0x3ac   : > { %2871 = vmatpush3.bf16.msra.mxu0 %v3087_v46  ;;  %2893 = vmatpush3.bf16.msra.mxu1 %v3088_v24 }
 0x44f   : > { %v2042_v1 = vpop.f32.mrf.mxu0  ;;  %v2113_v32 = vpop.f32.mrf.mxu1 }
 0x450   : > { %v2043_v43 = vadd.f32 %v2042_v1, %v1946_v51  ;;  %v2114_v50 = vadd.f32 %v2113_v32, %v1954_v35 }
 0x451   : > { %v2044_v17 = vpop.f32.mrf.mxu0  ;;  %v2115_v58 = vpop.f32.mrf.mxu1 }
 0x452   : > { %v2741_v34 = vmul.f32 -1.442695, %v2043_v43  ;;  %v2743_v30 = vmul.f32 -1.442695, %v2114_v50  ;;  %v2045_v52 = vadd.f32 %v2044_v17, %v1950_v14  ;;  %v2116_v63 = vadd.f32 %v2115_v58, %v1958_v18  ;;  %v3174_v14 = vld [vmem:[%s3665_s28 + $0x8] sm:$0xff] }
 0x454   : > { %3157 = vpow2.f32 %v2741_v34  ;;  %v2742_v57 = vmul.f32 -1.442695, %v2045_v52  ;;  %v2744_v45 = vmul.f32 -1.442695, %v2116_v63 }
 0x455   : > { %3159 = vpow2.f32 %v2743_v30 }
 0x456   : > { %3161 = vpow2.f32 %v2742_v57 }
 0x457   : > { %3163 = vpow2.f32 %v2744_v45 }
 0x461   : > { %v3158_v39 = vpop.eup %3157 }
 0x462   : > { %v3160_v47 = vpop.eup %3159  ;;  %v2130_v40 = vadd.f32 1.0, %v3158_v39 }
 0x463   : > { %v3162_v42 = vpop.eup %3161  ;;  %v2132_v11 = vadd.f32 1.0, %v3160_v47 }
 0x464   : > { %v3164_v6 = vpop.eup %3163  ;;  %3165 = vrcp.f32 %v2130_v40  ;;  %v2131_v21 = vadd.f32 1.0, %v3162_v42 }
 0x465   : > { %3167 = vrcp.f32 %v2132_v11  ;;  %v2133_v7 = vadd.f32 1.0, %v3164_v6 }
 0x466   : > { %3169 = vrcp.f32 %v2131_v21 }
 0x467   : > { %3171 = vrcp.f32 %v2133_v7 }
 0x471   : > { %v3166_v3 = vpop.eup %3165 }
 0x472   : > { %v3168_v56 = vpop.eup %3167  ;;  %v2145_v5 = vrot.slane %v3166_v3, %v3785_v38 }
 0x473   : > { %v3170_v49 = vpop.eup %3169  ;;  %v2153_v55 = vrot.slane %v3168_v56, %v3785_v38 }
 0x474   : > { %v3172_v9 = vpop.eup %3171  ;;  %v2149_v15 = vrot.slane %v3170_v49, %v3785_v38  ;;  %v2158_v0 = vmul.f32 %v2145_v5, %v4673_v26  ;;  %v2162_v12 = vmul.f32 %v2145_v5, %v4671_v54 }
 0x475   : > { %v2157_v59 = vrot.slane %v3172_v9, %v3785_v38  ;;  %v2160_v10 = vmul.f32 %v2153_v55, %v4669_v25  ;;  %v2164_v13 = vmul.f32 %v2153_v55, %v4667_v60 }
 0x476   : > { %v2159_v22 = vmul.f32 %v2149_v15, %v4663_v4  ;;  %v2163_v37 = vmul.f32 %v2149_v15, %v4665_v29  ;;  %v2166_v20 = vpack.c.bf16 %v2162_v12, %v2158_v0 }
 0x477   : > { %v2161_v27 = vmul.f32 %v2157_v59, %v4677_v62  ;;  %v2165_v48 = vmul.f32 %v2157_v59, %v4679_v31  ;;  %v2168_v38 = vpack.c.bf16 %v2164_v13, %v2160_v10  ;;  %v2777_v62 = vld [vmem:[%s4879_s12] ss:$0 sm:$0xff] }
 0x478   : > { %v2167_v2 = vpack.c.bf16 %v2163_v37, %v2159_v22 }
 0x479   : > { %v2169_v41 = vpack.c.bf16 %v2165_v48, %v2161_v27 }
 0x47a   : > { %2458 = vmatprep.mubr.bf16.mxu0 %v2167_v2 }
 0x47b   : > { %2499 = vmatprep.mubr.bf16.mxu1 %v2169_v41  ;;  %2459 = vmatmul.mubr.bf16.vlgmr.msra.gmra.mxu0 %v2166_v20 }
 0x47c   : > { %2500 = vmatmul.mubr.bf16.vlgmr.msra.gmra.mxu1 %v2168_v38 }
 0x53b   : > { %v2872_v54 = vpop.f32.mrf.mxu0 }
 0x53c   : > { %v2894_v4 = vpop.f32.mrf.mxu1 }
 0x53d   : > { %v2873_v26 = vpop.f32.mrf.mxu0 }
 0x53e   : > { %v2874_v29 = vadd.f32 %v2873_v26, %v2872_v54  ;;  %v2895_v25 = vpop.f32.mrf.mxu1 }
 0x53f   : > { %v2896_v28 = vadd.f32 %v2895_v25, %v2894_v4  ;;  %v2875_v60 = vpop.f32.mrf.mxu0 }
 0x540   : > { %v2897_v31 = vpop.f32.mrf.mxu1 }
 0x541   : > { %v2502_v23 = vadd.f32 %v2896_v28, %v2874_v29  ;;  %v2876_v53 = vpop.f32.mrf.mxu0 }
 0x542   : > { %v2877_v16 = vadd.f32 %v2876_v53, %v2875_v60  ;;  %v2898_v61 = vpop.f32.mrf.mxu1 }
 0x543   : > { %v2515_v44 = vmul.f32 %v2777_v62, %v2502_v23  ;;  %v2899_v36 = vadd.f32 %v2898_v61, %v2897_v31 }
 0x545   : > { %v2524_v46 = vadd.f32 %v2778_v33, %v2515_v44  ;;  %v2505_v24 = vadd.f32 %v2899_v36, %v2877_v16 }
 0x547   : > { %v2526_v51 = vadd.f32 %v3173_v19, %v2524_v46  ;;  %v2516_v35 = vmul.f32 %v2777_v62, %v2505_v24 }
 0x549   : > { %2528 = vst [vmem:[%s550_s26] sm:$0xff] %v2526_v51  ;;  %v2525_v8 = vadd.f32 %v2778_v33, %v2516_v35 }
 0x54b   : > { %v2527_v18 = vadd.f32 %v3174_v14, %v2525_v8 }
 0x54d   : > { %2529 = vst [vmem:[%s550_s26 + $0x8] sm:$0xff] %v2527_v18 }
 0x54e   : > { %3346 = shalt.err (!%p3343_p13)
}
 0x54f   : > { %s3347_s28 = scalar_lea.hbm %s4821_s14, 256  ;;  %s3351_s17 = scalar_lea.hbm %s4976_s8, 512 }
 0x550   : > { %p3348_p6 = scmp.ne.s32.totalorder %s4821_s14, %s3347_s28  ;;  %p3352_p8 = scmp.lt.s32.totalorder %s4821_s14, %s4976_s8 }
 0x551   : > { %p3353_p9 = scmp.lt.s32.totalorder %s3351_s17, %s3347_s28 }
 0x552   : > { %p3349_p3 = pnand %p3348_p6, %p4977_p12 }
 0x553   : > { %p3354_p10 = por %p3353_p9, %p3352_p8 }
 0x554   : > { %p3350_p0 = pneg %p3349_p3 }
 0x556   : > { %p3355_p11 = pnand %p3354_p10, %p3350_p0 }
 0x558   : > { %3358 = shalt.err (!%p3355_p11)
}
 0x559   : > { %s3427_s2 = smov 128   ;;  %s3428_s19 = smov 8  }
 0x55a   : > { %2922 = dma.vmem_to_hbm [thread:$0]  (%p4977_p12), %s4823_s23, 256, %s4821_s14, %s2531_s24, %s3427_s2, %s3427_s2, %s3428_s19  }
 0x55b PF: > { %s2559_s15 = sand.u32 1, %s3397_s29   ;;  %p4978_p1 = scmp.ne.s32.totalorder %s4922_s21, 0 }
 0x55c   : > { %p4979_p4 = scmp.ge.s32.totalorder %s3409_s16, 2  ;;  %s2560_s4 = scalar_lea.sflag [#allocation4], %s2559_s15 }
 0x55e   : > { %p2945_p2 = pnand %p4979_p4, %p4978_p1 }
 0x560   : > { %p2946_p5 = pneg %p2945_p2 }
 0x562   : > { %3392 = dma.done.wait (%p2946_p5), %s2560_s4, 256  }
 0x563   : > { %3394 = vsyncadd (%p2946_p5), %s2560_s4, 4294967040  ;;  %s4980_s6 = sld [smem:[#allocation19_spill]]  ;;  %p30_p7 = scmp.ge.s32.totalorder %s3593_s25, 4  }
 0x564   : > { %s4981_s15 = sld [smem:[#allocation20_spill]]  ;;  %s4982_s29 = smov %s3401_s30 }
 0x565   : > { %s4984_s16 = smov %s3593_s25  ;;  %32 = sbr.rel (!%p30_p7) target bundleno = 15 (0xf), region = 149 }
 0x569   : > { %s4983_s30 = smov %s4980_s6 }
 0x56a   :  { %2565 = vsyncpa [#allocation3], 1 }
 0x56b   :  { %2567 = vsyncpa [#allocation3 + $0x1], 1 }
 0x56c   :  { %2568 = vsyncpa [#allocation6], 1 }
 0x56d   :  { %2569 = vsyncpa [#allocation9], 1 }
 0x56e   :  { %2570 = vsyncpa [#allocation12], 1 }
 0x56f   :  { %2571 = vsyncpa [#allocation4], 1 }
 0x570   :  { %2573 = vsyncpa [#allocation4 + $0x1], 1 }

</bundles_post_ra>
